<compile_context>
chip_gen: v5e
topology: v5e:2x2
jax: 0.10.0
libtpu: 0.0.40
codegen_flags: <defaults>
</compile_context>

<pallas_src>
import functools

import jax
import jax.numpy as jnp
import numpy as np
from jax.experimental import pallas as pl
from jax.experimental.pallas import tpu as pltpu

SCALING = 0.1


def _resnet_block_kernel(w1_ref, w2_ref, alpha_ref, x_ref, out_ref, *,
                         Nb, C, H, W, scaling):
    # w1_ref, w2_ref : VMEM f32[9, C, Nb*C, 1]  per-tap weight-column slabs,
    #                  w[t, d, n*C + c, 0] = w_torch[d, c, ky, kx], t = 3*ky+kx
    # alpha_ref      : SMEM f32[1]              shared PReLU slope
    # x_ref, out_ref : VMEM f32[Nb, C, H*W]     Nb images, spatial flattened
    HW = H * W
    R = Nb * C
    alpha = alpha_ref[0]

    # --- boundary masks: built ONCE per invocation, shared by both convs.
    pos = jax.lax.broadcasted_iota(jnp.int32, (1, HW), 1)
    if (W & (W - 1)) == 0:                      # power-of-two width: shift/and
        hh = pos >> (W.bit_length() - 1)
        ww = pos & (W - 1)
    else:
        hh = pos // W
        ww = pos % W
    row_ok = {-1: hh >= 1, 0: None, 1: hh <= H - 2}
    col_ok = {-1: ww >= 1, 0: None, 1: ww <= W - 2}
    masks = {}
    for dy in (-1, 0, 1):
        for dx in (-1, 0, 1):
            m = None
            for part in (row_ok[dy], col_ok[dx]):
                if part is not None:
                    m = part if m is None else jnp.logical_and(m, part)
            masks[(dy, dx)] = None if m is None else m.astype(jnp.float32)

    def conv3x3(stack, w_ref):
        """stack: (R, HW) planes, row = n*C + c.  Returns (Nb, C, HW)."""
        acc = None                                         # (C_out, R, HW)
        for ky in range(3):
            for kx in range(3):
                dy, dx = ky - 1, kx - 1
                off = dy * W + dx
                t = ky * 3 + kx
                # Shifted view stack[:, p + off]; mask kills roll wraparound so
                # out-of-image taps contribute exactly zero (SAME zero padding).
                s = stack if off == 0 else pltpu.roll(
                    stack, shift=(-off) % HW, axis=1)
                m = masks[(dy, dx)]
                if m is not None:
                    s = s * m
                contrib = w_ref[t] * s[None, :, :]         # (C,R,1)*(1,R,HW)
                acc = contrib if acc is None else acc + contrib
        # Contract the input-channel (sublane) axis once per conv.
        if Nb == 1:
            return jnp.sum(acc, axis=1)[None]              # (1, C, HW)
        red = jnp.sum(acc.reshape(C, Nb, C, HW), axis=2)   # (C_out, Nb, HW)
        return jnp.swapaxes(red, 0, 1)                     # (Nb, C_out, HW)

    x3 = x_ref[...]                                        # (Nb, C, HW)
    x2 = x3.reshape(R, HW)

    h = conv3x3(x2, w1_ref)                                # conv1
    h = jnp.where(h > 0, h, alpha * h)                     # PReLU (shared alpha)
    y = conv3x3(h.reshape(R, HW), w2_ref)                  # conv2

    # Scaled residual (matches the PyTorch module: h += scaling * x);
    # single lane+sublane-dense store of the whole block.
    out_ref[...] = y + scaling * x3


def _pick_batch_fold(N, C, HW, itemsize=4, max_block_bytes=4 << 20):
    """Largest Nb dividing N that keeps >=2 grid steps (v7x megacore) and a
    modest per-step block.  For N=2 this is Nb=1 (grid=(2,))."""
    best = 1
    for nb in range(1, N + 1):
        if N % nb:
            continue
        if N >= 2 and N // nb < 2:
            continue
        if nb * C * HW * itemsize > max_block_bytes:
            continue
        best = max(best, nb)
    return best


def _prep_weight_columns(w, Nb):
    """(C_out, C_in, 3, 3) OIHW -> f32[9, C_out, Nb*C_in, 1] per-tap columns."""
    C_out, C_in = int(w.shape[0]), int(w.shape[1])
    w9 = jnp.asarray(w, jnp.float32).reshape(C_out, C_in, 9).transpose(2, 0, 1)
    w9 = jnp.tile(w9[:, :, None, :], (1, 1, Nb, 1))        # (9, C_out, Nb, C_in)
    return w9.reshape(9, C_out, Nb * C_in, 1)


def resnet_block(x, w1, w2, alpha, scaling=SCALING):
    """x: f32[N, C, H, W]; w1, w2: f32[C, C, 3, 3] (OIHW); alpha: scalar."""
    N, C, H, W = x.shape
    HW = H * W
    Nb = _pick_batch_fold(N, C, HW)
    R = Nb * C

    x_flat = jnp.asarray(x, jnp.float32).reshape(N, C, HW)  # free reshape, no pad
    w1_cols = _prep_weight_columns(w1, Nb)
    w2_cols = _prep_weight_columns(w2, Nb)
    alpha_arr = jnp.asarray(alpha, jnp.float32).reshape(1)

    kernel = functools.partial(_resnet_block_kernel, Nb=Nb, C=C, H=H, W=W,
                               scaling=float(scaling))
    flops = 2 * (2 * 9 * C * C * HW) * N                   # two convs, 2 flops/MAC
    bytes_accessed = 2 * N * C * HW * 4 + 2 * 9 * C * R * 4

    out_flat = pl.pallas_call(
        kernel,
        grid=(N // Nb,),
        out_shape=jax.ShapeDtypeStruct((N, C, HW), jnp.float32),
        in_specs=[
            pl.BlockSpec((9, C, R, 1), lambda n: (0, 0, 0, 0)),  # conv1 columns
            pl.BlockSpec((9, C, R, 1), lambda n: (0, 0, 0, 0)),  # conv2 columns
            pl.BlockSpec(memory_space=pltpu.MemorySpace.SMEM),   # alpha (scalar)
            pl.BlockSpec((Nb, C, HW), lambda n: (n, 0, 0)),      # Nb images / step
        ],
        out_specs=pl.BlockSpec((Nb, C, HW), lambda n: (n, 0, 0)),
        compiler_params=pltpu.CompilerParams(
            dimension_semantics=("parallel",)),
        cost_estimate=pl.CostEstimate(flops=flops, transcendentals=0,
                                      bytes_accessed=bytes_accessed),
    )(w1_cols, w2_cols, alpha_arr, x_flat)
    return out_flat.reshape(N, C, H, W)


def resnet_block_reference(x, w1, w2, alpha, scaling=SCALING):
    dn = jax.lax.conv_dimension_numbers(x.shape, w1.shape, ('NCHW', 'OIHW', 'NCHW'))
    h = jax.lax.conv_general_dilated(x, w1, (1, 1), 'SAME', dimension_numbers=dn,
                                     precision=jax.lax.Precision.HIGHEST)
    h = jnp.where(h > 0, h, alpha * h)
    h = jax.lax.conv_general_dilated(h, w2, (1, 1), 'SAME', dimension_numbers=dn,
                                     precision=jax.lax.Precision.HIGHEST)
    return h + scaling * x


if __name__ == "__main__":
    key = jax.random.PRNGKey(0)
    kx, k1, k2 = jax.random.split(key, 3)

    N, C, H, W = 2, 4, 16, 16
    x = jax.random.normal(kx, (N, C, H, W), dtype=jnp.float32)
    # PyTorch shapes: Conv2d weights (C_out, C_in, 3, 3), no bias.
    w1 = 0.1 * jax.random.normal(k1, (C, C, 3, 3), dtype=jnp.float32)
    w2 = 0.1 * jax.random.normal(k2, (C, C, 3, 3), dtype=jnp.float32)
    alpha = 0.2  # PReLU(init=0.2), single shared parameter

    out = jax.block_until_ready(jax.jit(resnet_block)(x, w1, w2, alpha))
    ref = jax.block_until_ready(resnet_block_reference(x, w1, w2, alpha))
    np.testing.assert_allclose(np.asarray(out), np.asarray(ref), atol=1e-4, rtol=1e-4)

    print("KERNEL_OK")
</pallas_src>

<mosaic_0001>
module attributes {stable_mosaic.version = 11 : i64} {
  func.func @_resnet_block_kernel(%arg0: i32, %arg1: memref<9x4x4x1xf32, #tpu.memory_space<vmem>>, %arg2: memref<9x4x4x1xf32, #tpu.memory_space<vmem>>, %arg3: memref<1xf32, #tpu.memory_space<smem>>, %arg4: memref<1x4x256xf32, #tpu.memory_space<vmem>>, %arg5: memref<1x4x256xf32, #tpu.memory_space<vmem>>) attributes {dimension_semantics = [#tpu.dimension_semantics<parallel>], iteration_bounds = array<i64: 2>, scalar_prefetch = 0 : i64, scratch_operands = 0 : i64, tpu.core_type = #tpu.core_type<tc>, window_params = [{pipeline_mode = #tpu.pipeline_mode<synchronous>, transform_indices = @transform_0, window_bounds = array<i64: 9, 4, 4, 1>}, {pipeline_mode = #tpu.pipeline_mode<synchronous>, transform_indices = @transform_1, window_bounds = array<i64: 9, 4, 4, 1>}, {transform_indices = @transform_2, window_bounds = array<i64: 1>}, {transform_indices = @transform_3, window_bounds = array<i64: 1, 4, 256>}, {transform_indices = @transform_4, window_bounds = array<i64: 1, 4, 256>}]} {
    %c0 = arith.constant 0 : index
    %0 = memref.load %arg3[%c0] : memref<1xf32, #tpu.memory_space<smem>>
    %1 = tpu.iota {dimensions = array<i32: 1>} : vector<1x256xi32>
    %c4_i32 = arith.constant 4 : i32
    %2 = vector.broadcast %c4_i32 : i32 to vector<1x256xi32>
    %3 = arith.shrsi %1, %2 : vector<1x256xi32>
    %c15_i32 = arith.constant 15 : i32
    %4 = vector.broadcast %c15_i32 : i32 to vector<1x256xi32>
    %5 = arith.andi %1, %4 : vector<1x256xi32>
    %c1_i32 = arith.constant 1 : i32
    %6 = vector.broadcast %c1_i32 : i32 to vector<1x256xi32>
    %7 = arith.cmpi sge, %3, %6 : vector<1x256xi32>
    %c14_i32 = arith.constant 14 : i32
    %8 = vector.broadcast %c14_i32 : i32 to vector<1x256xi32>
    %9 = arith.cmpi sle, %3, %8 : vector<1x256xi32>
    %c1_i32_0 = arith.constant 1 : i32
    %10 = vector.broadcast %c1_i32_0 : i32 to vector<1x256xi32>
    %11 = arith.cmpi sge, %5, %10 : vector<1x256xi32>
    %c14_i32_1 = arith.constant 14 : i32
    %12 = vector.broadcast %c14_i32_1 : i32 to vector<1x256xi32>
    %13 = arith.cmpi sle, %5, %12 : vector<1x256xi32>
    %14 = arith.andi %7, %11 : vector<1x256xi1>
    %15 = arith.extui %14 : vector<1x256xi1> to vector<1x256xi32>
    %16 = arith.sitofp %15 : vector<1x256xi32> to vector<1x256xf32>
    %17 = arith.extui %7 : vector<1x256xi1> to vector<1x256xi32>
    %18 = arith.sitofp %17 : vector<1x256xi32> to vector<1x256xf32>
    %19 = arith.andi %7, %13 : vector<1x256xi1>
    %20 = arith.extui %19 : vector<1x256xi1> to vector<1x256xi32>
    %21 = arith.sitofp %20 : vector<1x256xi32> to vector<1x256xf32>
    %22 = arith.extui %11 : vector<1x256xi1> to vector<1x256xi32>
    %23 = arith.sitofp %22 : vector<1x256xi32> to vector<1x256xf32>
    %24 = arith.extui %13 : vector<1x256xi1> to vector<1x256xi32>
    %25 = arith.sitofp %24 : vector<1x256xi32> to vector<1x256xf32>
    %26 = arith.andi %9, %11 : vector<1x256xi1>
    %27 = arith.extui %26 : vector<1x256xi1> to vector<1x256xi32>
    %28 = arith.sitofp %27 : vector<1x256xi32> to vector<1x256xf32>
    %29 = arith.extui %9 : vector<1x256xi1> to vector<1x256xi32>
    %30 = arith.sitofp %29 : vector<1x256xi32> to vector<1x256xf32>
    %31 = arith.andi %9, %13 : vector<1x256xi1>
    %32 = arith.extui %31 : vector<1x256xi1> to vector<1x256xi32>
    %33 = arith.sitofp %32 : vector<1x256xi32> to vector<1x256xf32>
    %c0_2 = arith.constant 0 : index
    %c0_3 = arith.constant 0 : index
    %c0_4 = arith.constant 0 : index
    %34 = vector.load %arg4[%c0_2, %c0_3, %c0_4] : memref<1x4x256xf32, #tpu.memory_space<vmem>>, vector<1x4x256xf32>
    %35 = vector.shape_cast %34 : vector<1x4x256xf32> to vector<4x256xf32>
    %c17_i32 = arith.constant 17 : i32
    %36 = tpu.dynamic_rotate %35 by %c17_i32 dim 1 : vector<4x256xf32>, i32 -> vector<4x256xf32>
    %37 = vector.broadcast %16 : vector<1x256xf32> to vector<4x256xf32>
    %38 = arith.mulf %36, %37 : vector<4x256xf32>
    %c0_5 = arith.constant 0 : index
    %c0_6 = arith.constant 0 : index
    %c0_7 = arith.constant 0 : index
    %c0_8 = arith.constant 0 : index
    %39 = vector.load %arg1[%c0_5, %c0_6, %c0_7, %c0_8] : memref<9x4x4x1xf32, #tpu.memory_space<vmem>>, vector<1x4x4x1xf32>
    %40 = vector.shape_cast %39 : vector<1x4x4x1xf32> to vector<4x4x1xf32>
    %41 = vector.shape_cast %38 : vector<4x256xf32> to vector<1x4x256xf32>
    %42 = vector.broadcast %40 : vector<4x4x1xf32> to vector<4x4x256xf32>
    %43 = vector.broadcast %41 : vector<1x4x256xf32> to vector<4x4x256xf32>
    %44 = arith.mulf %42, %43 : vector<4x4x256xf32>
    %c16_i32 = arith.constant 16 : i32
    %45 = tpu.dynamic_rotate %35 by %c16_i32 dim 1 : vector<4x256xf32>, i32 -> vector<4x256xf32>
    %46 = vector.broadcast %18 : vector<1x256xf32> to vector<4x256xf32>
    %47 = arith.mulf %45, %46 : vector<4x256xf32>
    %c1 = arith.constant 1 : index
    %c0_9 = arith.constant 0 : index
    %c0_10 = arith.constant 0 : index
    %c0_11 = arith.constant 0 : index
    %48 = vector.load %arg1[%c1, %c0_9, %c0_10, %c0_11] : memref<9x4x4x1xf32, #tpu.memory_space<vmem>>, vector<1x4x4x1xf32>
    %49 = vector.shape_cast %48 : vector<1x4x4x1xf32> to vector<4x4x1xf32>
    %50 = vector.shape_cast %47 : vector<4x256xf32> to vector<1x4x256xf32>
    %51 = vector.broadcast %49 : vector<4x4x1xf32> to vector<4x4x256xf32>
    %52 = vector.broadcast %50 : vector<1x4x256xf32> to vector<4x4x256xf32>
    %53 = arith.mulf %51, %52 : vector<4x4x256xf32>
    %54 = arith.addf %44, %53 : vector<4x4x256xf32>
    %c15_i32_12 = arith.constant 15 : i32
    %55 = tpu.dynamic_rotate %35 by %c15_i32_12 dim 1 : vector<4x256xf32>, i32 -> vector<4x256xf32>
    %56 = vector.broadcast %21 : vector<1x256xf32> to vector<4x256xf32>
    %57 = arith.mulf %55, %56 : vector<4x256xf32>
    %c2 = arith.constant 2 : index
    %c0_13 = arith.constant 0 : index
    %c0_14 = arith.constant 0 : index
    %c0_15 = arith.constant 0 : index
    %58 = vector.load %arg1[%c2, %c0_13, %c0_14, %c0_15] : memref<9x4x4x1xf32, #tpu.memory_space<vmem>>, vector<1x4x4x1xf32>
    %59 = vector.shape_cast %58 : vector<1x4x4x1xf32> to vector<4x4x1xf32>
    %60 = vector.shape_cast %57 : vector<4x256xf32> to vector<1x4x256xf32>
    %61 = vector.broadcast %59 : vector<4x4x1xf32> to vector<4x4x256xf32>
    %62 = vector.broadcast %60 : vector<1x4x256xf32> to vector<4x4x256xf32>
    %63 = arith.mulf %61, %62 : vector<4x4x256xf32>
    %64 = arith.addf %54, %63 : vector<4x4x256xf32>
    %c1_i32_16 = arith.constant 1 : i32
    %65 = tpu.dynamic_rotate %35 by %c1_i32_16 dim 1 : vector<4x256xf32>, i32 -> vector<4x256xf32>
    %66 = vector.broadcast %23 : vector<1x256xf32> to vector<4x256xf32>
    %67 = arith.mulf %65, %66 : vector<4x256xf32>
    %c3 = arith.constant 3 : index
    %c0_17 = arith.constant 0 : index
    %c0_18 = arith.constant 0 : index
    %c0_19 = arith.constant 0 : index
    %68 = vector.load %arg1[%c3, %c0_17, %c0_18, %c0_19] : memref<9x4x4x1xf32, #tpu.memory_space<vmem>>, vector<1x4x4x1xf32>
    %69 = vector.shape_cast %68 : vector<1x4x4x1xf32> to vector<4x4x1xf32>
    %70 = vector.shape_cast %67 : vector<4x256xf32> to vector<1x4x256xf32>
    %71 = vector.broadcast %69 : vector<4x4x1xf32> to vector<4x4x256xf32>
    %72 = vector.broadcast %70 : vector<1x4x256xf32> to vector<4x4x256xf32>
    %73 = arith.mulf %71, %72 : vector<4x4x256xf32>
    %74 = arith.addf %64, %73 : vector<4x4x256xf32>
    %c4 = arith.constant 4 : index
    %c0_20 = arith.constant 0 : index
    %c0_21 = arith.constant 0 : index
    %c0_22 = arith.constant 0 : index
    %75 = vector.load %arg1[%c4, %c0_20, %c0_21, %c0_22] : memref<9x4x4x1xf32, #tpu.memory_space<vmem>>, vector<1x4x4x1xf32>
    %76 = vector.shape_cast %75 : vector<1x4x4x1xf32> to vector<4x4x1xf32>
    %77 = vector.shape_cast %35 : vector<4x256xf32> to vector<1x4x256xf32>
    %78 = vector.broadcast %76 : vector<4x4x1xf32> to vector<4x4x256xf32>
    %79 = vector.broadcast %77 : vector<1x4x256xf32> to vector<4x4x256xf32>
    %80 = arith.mulf %78, %79 : vector<4x4x256xf32>
    %81 = arith.addf %74, %80 : vector<4x4x256xf32>
    %c255_i32 = arith.constant 255 : i32
    %82 = tpu.dynamic_rotate %35 by %c255_i32 dim 1 : vector<4x256xf32>, i32 -> vector<4x256xf32>
    %83 = vector.broadcast %25 : vector<1x256xf32> to vector<4x256xf32>
    %84 = arith.mulf %82, %83 : vector<4x256xf32>
    %c5 = arith.constant 5 : index
    %c0_23 = arith.constant 0 : index
    %c0_24 = arith.constant 0 : index
    %c0_25 = arith.constant 0 : index
    %85 = vector.load %arg1[%c5, %c0_23, %c0_24, %c0_25] : memref<9x4x4x1xf32, #tpu.memory_space<vmem>>, vector<1x4x4x1xf32>
    %86 = vector.shape_cast %85 : vector<1x4x4x1xf32> to vector<4x4x1xf32>
    %87 = vector.shape_cast %84 : vector<4x256xf32> to vector<1x4x256xf32>
    %88 = vector.broadcast %86 : vector<4x4x1xf32> to vector<4x4x256xf32>
    %89 = vector.broadcast %87 : vector<1x4x256xf32> to vector<4x4x256xf32>
    %90 = arith.mulf %88, %89 : vector<4x4x256xf32>
    %91 = arith.addf %81, %90 : vector<4x4x256xf32>
    %c241_i32 = arith.constant 241 : i32
    %92 = tpu.dynamic_rotate %35 by %c241_i32 dim 1 : vector<4x256xf32>, i32 -> vector<4x256xf32>
    %93 = vector.broadcast %28 : vector<1x256xf32> to vector<4x256xf32>
    %94 = arith.mulf %92, %93 : vector<4x256xf32>
    %c6 = arith.constant 6 : index
    %c0_26 = arith.constant 0 : index
    %c0_27 = arith.constant 0 : index
    %c0_28 = arith.constant 0 : index
    %95 = vector.load %arg1[%c6, %c0_26, %c0_27, %c0_28] : memref<9x4x4x1xf32, #tpu.memory_space<vmem>>, vector<1x4x4x1xf32>
    %96 = vector.shape_cast %95 : vector<1x4x4x1xf32> to vector<4x4x1xf32>
    %97 = vector.shape_cast %94 : vector<4x256xf32> to vector<1x4x256xf32>
    %98 = vector.broadcast %96 : vector<4x4x1xf32> to vector<4x4x256xf32>
    %99 = vector.broadcast %97 : vector<1x4x256xf32> to vector<4x4x256xf32>
    %100 = arith.mulf %98, %99 : vector<4x4x256xf32>
    %101 = arith.addf %91, %100 : vector<4x4x256xf32>
    %c240_i32 = arith.constant 240 : i32
    %102 = tpu.dynamic_rotate %35 by %c240_i32 dim 1 : vector<4x256xf32>, i32 -> vector<4x256xf32>
    %103 = vector.broadcast %30 : vector<1x256xf32> to vector<4x256xf32>
    %104 = arith.mulf %102, %103 : vector<4x256xf32>
    %c7 = arith.constant 7 : index
    %c0_29 = arith.constant 0 : index
    %c0_30 = arith.constant 0 : index
    %c0_31 = arith.constant 0 : index
    %105 = vector.load %arg1[%c7, %c0_29, %c0_30, %c0_31] : memref<9x4x4x1xf32, #tpu.memory_space<vmem>>, vector<1x4x4x1xf32>
    %106 = vector.shape_cast %105 : vector<1x4x4x1xf32> to vector<4x4x1xf32>
    %107 = vector.shape_cast %104 : vector<4x256xf32> to vector<1x4x256xf32>
    %108 = vector.broadcast %106 : vector<4x4x1xf32> to vector<4x4x256xf32>
    %109 = vector.broadcast %107 : vector<1x4x256xf32> to vector<4x4x256xf32>
    %110 = arith.mulf %108, %109 : vector<4x4x256xf32>
    %111 = arith.addf %101, %110 : vector<4x4x256xf32>
    %c239_i32 = arith.constant 239 : i32
    %112 = tpu.dynamic_rotate %35 by %c239_i32 dim 1 : vector<4x256xf32>, i32 -> vector<4x256xf32>
    %113 = vector.broadcast %33 : vector<1x256xf32> to vector<4x256xf32>
    %114 = arith.mulf %112, %113 : vector<4x256xf32>
    %c8 = arith.constant 8 : index
    %c0_32 = arith.constant 0 : index
    %c0_33 = arith.constant 0 : index
    %c0_34 = arith.constant 0 : index
    %115 = vector.load %arg1[%c8, %c0_32, %c0_33, %c0_34] : memref<9x4x4x1xf32, #tpu.memory_space<vmem>>, vector<1x4x4x1xf32>
    %116 = vector.shape_cast %115 : vector<1x4x4x1xf32> to vector<4x4x1xf32>
    %117 = vector.shape_cast %114 : vector<4x256xf32> to vector<1x4x256xf32>
    %118 = vector.broadcast %116 : vector<4x4x1xf32> to vector<4x4x256xf32>
    %119 = vector.broadcast %117 : vector<1x4x256xf32> to vector<4x4x256xf32>
    %120 = arith.mulf %118, %119 : vector<4x4x256xf32>
    %121 = arith.addf %111, %120 : vector<4x4x256xf32>
    %cst = arith.constant dense<0.000000e+00> : vector<4x256xf32>
    %122 = vector.multi_reduction <add>, %121, %cst [1] : vector<4x4x256xf32> to vector<4x256xf32>
    %123 = vector.shape_cast %122 : vector<4x256xf32> to vector<1x4x256xf32>
    %cst_35 = arith.constant 0.000000e+00 : f32
    %124 = vector.broadcast %cst_35 : f32 to vector<1x4x256xf32>
    %125 = arith.cmpf ogt, %123, %124 : vector<1x4x256xf32>
    %126 = vector.broadcast %0 : f32 to vector<1x4x256xf32>
    %127 = arith.mulf %126, %123 : vector<1x4x256xf32>
    %128 = arith.select %125, %123, %127 : vector<1x4x256xi1>, vector<1x4x256xf32>
    %129 = vector.shape_cast %128 : vector<1x4x256xf32> to vector<4x256xf32>
    %c17_i32_36 = arith.constant 17 : i32
    %130 = tpu.dynamic_rotate %129 by %c17_i32_36 dim 1 : vector<4x256xf32>, i32 -> vector<4x256xf32>
    %131 = vector.broadcast %16 : vector<1x256xf32> to vector<4x256xf32>
    %132 = arith.mulf %130, %131 : vector<4x256xf32>
    %c0_37 = arith.constant 0 : index
    %c0_38 = arith.constant 0 : index
    %c0_39 = arith.constant 0 : index
    %c0_40 = arith.constant 0 : index
    %133 = vector.load %arg2[%c0_37, %c0_38, %c0_39, %c0_40] : memref<9x4x4x1xf32, #tpu.memory_space<vmem>>, vector<1x4x4x1xf32>
    %134 = vector.shape_cast %133 : vector<1x4x4x1xf32> to vector<4x4x1xf32>
    %135 = vector.shape_cast %132 : vector<4x256xf32> to vector<1x4x256xf32>
    %136 = vector.broadcast %134 : vector<4x4x1xf32> to vector<4x4x256xf32>
    %137 = vector.broadcast %135 : vector<1x4x256xf32> to vector<4x4x256xf32>
    %138 = arith.mulf %136, %137 : vector<4x4x256xf32>
    %c16_i32_41 = arith.constant 16 : i32
    %139 = tpu.dynamic_rotate %129 by %c16_i32_41 dim 1 : vector<4x256xf32>, i32 -> vector<4x256xf32>
    %140 = vector.broadcast %18 : vector<1x256xf32> to vector<4x256xf32>
    %141 = arith.mulf %139, %140 : vector<4x256xf32>
    %c1_42 = arith.constant 1 : index
    %c0_43 = arith.constant 0 : index
    %c0_44 = arith.constant 0 : index
    %c0_45 = arith.constant 0 : index
    %142 = vector.load %arg2[%c1_42, %c0_43, %c0_44, %c0_45] : memref<9x4x4x1xf32, #tpu.memory_space<vmem>>, vector<1x4x4x1xf32>
    %143 = vector.shape_cast %142 : vector<1x4x4x1xf32> to vector<4x4x1xf32>
    %144 = vector.shape_cast %141 : vector<4x256xf32> to vector<1x4x256xf32>
    %145 = vector.broadcast %143 : vector<4x4x1xf32> to vector<4x4x256xf32>
    %146 = vector.broadcast %144 : vector<1x4x256xf32> to vector<4x4x256xf32>
    %147 = arith.mulf %145, %146 : vector<4x4x256xf32>
    %148 = arith.addf %138, %147 : vector<4x4x256xf32>
    %c15_i32_46 = arith.constant 15 : i32
    %149 = tpu.dynamic_rotate %129 by %c15_i32_46 dim 1 : vector<4x256xf32>, i32 -> vector<4x256xf32>
    %150 = vector.broadcast %21 : vector<1x256xf32> to vector<4x256xf32>
    %151 = arith.mulf %149, %150 : vector<4x256xf32>
    %c2_47 = arith.constant 2 : index
    %c0_48 = arith.constant 0 : index
    %c0_49 = arith.constant 0 : index
    %c0_50 = arith.constant 0 : index
    %152 = vector.load %arg2[%c2_47, %c0_48, %c0_49, %c0_50] : memref<9x4x4x1xf32, #tpu.memory_space<vmem>>, vector<1x4x4x1xf32>
    %153 = vector.shape_cast %152 : vector<1x4x4x1xf32> to vector<4x4x1xf32>
    %154 = vector.shape_cast %151 : vector<4x256xf32> to vector<1x4x256xf32>
    %155 = vector.broadcast %153 : vector<4x4x1xf32> to vector<4x4x256xf32>
    %156 = vector.broadcast %154 : vector<1x4x256xf32> to vector<4x4x256xf32>
    %157 = arith.mulf %155, %156 : vector<4x4x256xf32>
    %158 = arith.addf %148, %157 : vector<4x4x256xf32>
    %c1_i32_51 = arith.constant 1 : i32
    %159 = tpu.dynamic_rotate %129 by %c1_i32_51 dim 1 : vector<4x256xf32>, i32 -> vector<4x256xf32>
    %160 = vector.broadcast %23 : vector<1x256xf32> to vector<4x256xf32>
    %161 = arith.mulf %159, %160 : vector<4x256xf32>
    %c3_52 = arith.constant 3 : index
    %c0_53 = arith.constant 0 : index
    %c0_54 = arith.constant 0 : index
    %c0_55 = arith.constant 0 : index
    %162 = vector.load %arg2[%c3_52, %c0_53, %c0_54, %c0_55] : memref<9x4x4x1xf32, #tpu.memory_space<vmem>>, vector<1x4x4x1xf32>
    %163 = vector.shape_cast %162 : vector<1x4x4x1xf32> to vector<4x4x1xf32>
    %164 = vector.shape_cast %161 : vector<4x256xf32> to vector<1x4x256xf32>
    %165 = vector.broadcast %163 : vector<4x4x1xf32> to vector<4x4x256xf32>
    %166 = vector.broadcast %164 : vector<1x4x256xf32> to vector<4x4x256xf32>
    %167 = arith.mulf %165, %166 : vector<4x4x256xf32>
    %168 = arith.addf %158, %167 : vector<4x4x256xf32>
    %c4_56 = arith.constant 4 : index
    %c0_57 = arith.constant 0 : index
    %c0_58 = arith.constant 0 : index
    %c0_59 = arith.constant 0 : index
    %169 = vector.load %arg2[%c4_56, %c0_57, %c0_58, %c0_59] : memref<9x4x4x1xf32, #tpu.memory_space<vmem>>, vector<1x4x4x1xf32>
    %170 = vector.shape_cast %169 : vector<1x4x4x1xf32> to vector<4x4x1xf32>
    %171 = vector.shape_cast %129 : vector<4x256xf32> to vector<1x4x256xf32>
    %172 = vector.broadcast %170 : vector<4x4x1xf32> to vector<4x4x256xf32>
    %173 = vector.broadcast %171 : vector<1x4x256xf32> to vector<4x4x256xf32>
    %174 = arith.mulf %172, %173 : vector<4x4x256xf32>
    %175 = arith.addf %168, %174 : vector<4x4x256xf32>
    %c255_i32_60 = arith.constant 255 : i32
    %176 = tpu.dynamic_rotate %129 by %c255_i32_60 dim 1 : vector<4x256xf32>, i32 -> vector<4x256xf32>
    %177 = vector.broadcast %25 : vector<1x256xf32> to vector<4x256xf32>
    %178 = arith.mulf %176, %177 : vector<4x256xf32>
    %c5_61 = arith.constant 5 : index
    %c0_62 = arith.constant 0 : index
    %c0_63 = arith.constant 0 : index
    %c0_64 = arith.constant 0 : index
    %179 = vector.load %arg2[%c5_61, %c0_62, %c0_63, %c0_64] : memref<9x4x4x1xf32, #tpu.memory_space<vmem>>, vector<1x4x4x1xf32>
    %180 = vector.shape_cast %179 : vector<1x4x4x1xf32> to vector<4x4x1xf32>
    %181 = vector.shape_cast %178 : vector<4x256xf32> to vector<1x4x256xf32>
    %182 = vector.broadcast %180 : vector<4x4x1xf32> to vector<4x4x256xf32>
    %183 = vector.broadcast %181 : vector<1x4x256xf32> to vector<4x4x256xf32>
    %184 = arith.mulf %182, %183 : vector<4x4x256xf32>
    %185 = arith.addf %175, %184 : vector<4x4x256xf32>
    %c241_i32_65 = arith.constant 241 : i32
    %186 = tpu.dynamic_rotate %129 by %c241_i32_65 dim 1 : vector<4x256xf32>, i32 -> vector<4x256xf32>
    %187 = vector.broadcast %28 : vector<1x256xf32> to vector<4x256xf32>
    %188 = arith.mulf %186, %187 : vector<4x256xf32>
    %c6_66 = arith.constant 6 : index
    %c0_67 = arith.constant 0 : index
    %c0_68 = arith.constant 0 : index
    %c0_69 = arith.constant 0 : index
    %189 = vector.load %arg2[%c6_66, %c0_67, %c0_68, %c0_69] : memref<9x4x4x1xf32, #tpu.memory_space<vmem>>, vector<1x4x4x1xf32>
    %190 = vector.shape_cast %189 : vector<1x4x4x1xf32> to vector<4x4x1xf32>
    %191 = vector.shape_cast %188 : vector<4x256xf32> to vector<1x4x256xf32>
    %192 = vector.broadcast %190 : vector<4x4x1xf32> to vector<4x4x256xf32>
    %193 = vector.broadcast %191 : vector<1x4x256xf32> to vector<4x4x256xf32>
    %194 = arith.mulf %192, %193 : vector<4x4x256xf32>
    %195 = arith.addf %185, %194 : vector<4x4x256xf32>
    %c240_i32_70 = arith.constant 240 : i32
    %196 = tpu.dynamic_rotate %129 by %c240_i32_70 dim 1 : vector<4x256xf32>, i32 -> vector<4x256xf32>
    %197 = vector.broadcast %30 : vector<1x256xf32> to vector<4x256xf32>
    %198 = arith.mulf %196, %197 : vector<4x256xf32>
    %c7_71 = arith.constant 7 : index
    %c0_72 = arith.constant 0 : index
    %c0_73 = arith.constant 0 : index
    %c0_74 = arith.constant 0 : index
    %199 = vector.load %arg2[%c7_71, %c0_72, %c0_73, %c0_74] : memref<9x4x4x1xf32, #tpu.memory_space<vmem>>, vector<1x4x4x1xf32>
    %200 = vector.shape_cast %199 : vector<1x4x4x1xf32> to vector<4x4x1xf32>
    %201 = vector.shape_cast %198 : vector<4x256xf32> to vector<1x4x256xf32>
    %202 = vector.broadcast %200 : vector<4x4x1xf32> to vector<4x4x256xf32>
    %203 = vector.broadcast %201 : vector<1x4x256xf32> to vector<4x4x256xf32>
    %204 = arith.mulf %202, %203 : vector<4x4x256xf32>
    %205 = arith.addf %195, %204 : vector<4x4x256xf32>
    %c239_i32_75 = arith.constant 239 : i32
    %206 = tpu.dynamic_rotate %129 by %c239_i32_75 dim 1 : vector<4x256xf32>, i32 -> vector<4x256xf32>
    %207 = vector.broadcast %33 : vector<1x256xf32> to vector<4x256xf32>
    %208 = arith.mulf %206, %207 : vector<4x256xf32>
    %c8_76 = arith.constant 8 : index
    %c0_77 = arith.constant 0 : index
    %c0_78 = arith.constant 0 : index
    %c0_79 = arith.constant 0 : index
    %209 = vector.load %arg2[%c8_76, %c0_77, %c0_78, %c0_79] : memref<9x4x4x1xf32, #tpu.memory_space<vmem>>, vector<1x4x4x1xf32>
    %210 = vector.shape_cast %209 : vector<1x4x4x1xf32> to vector<4x4x1xf32>
    %211 = vector.shape_cast %208 : vector<4x256xf32> to vector<1x4x256xf32>
    %212 = vector.broadcast %210 : vector<4x4x1xf32> to vector<4x4x256xf32>
    %213 = vector.broadcast %211 : vector<1x4x256xf32> to vector<4x4x256xf32>
    %214 = arith.mulf %212, %213 : vector<4x4x256xf32>
    %215 = arith.addf %205, %214 : vector<4x4x256xf32>
    %cst_80 = arith.constant dense<0.000000e+00> : vector<4x256xf32>
    %216 = vector.multi_reduction <add>, %215, %cst_80 [1] : vector<4x4x256xf32> to vector<4x256xf32>
    %217 = vector.shape_cast %216 : vector<4x256xf32> to vector<1x4x256xf32>
    %cst_81 = arith.constant 1.000000e-01 : f32
    %218 = vector.broadcast %cst_81 : f32 to vector<1x4x256xf32>
    %219 = arith.mulf %218, %34 : vector<1x4x256xf32>
    %220 = arith.addf %217, %219 : vector<1x4x256xf32>
    %c0_82 = arith.constant 0 : index
    %c0_83 = arith.constant 0 : index
    %c0_84 = arith.constant 0 : index
    %221 = vector.load %arg5[%c0_82, %c0_83, %c0_84] : memref<1x4x256xf32, #tpu.memory_space<vmem>>, vector<1x4x256xf32>
    tpu.vector_store %arg5[%c0_82, %c0_83, %c0_84], %220 {strides = array<i32>} : memref<1x4x256xf32, #tpu.memory_space<vmem>>, vector<1x4x256xf32>,
    return
  }
  func.func @transform_0(%arg0: i32) -> (i32, i32, i32, i32) {
    %c0_i32 = arith.constant 0 : i32
    %c0_i32_0 = arith.constant 0 : i32
    %c0_i32_1 = arith.constant 0 : i32
    %c0_i32_2 = arith.constant 0 : i32
    %c0_i32_3 = arith.constant 0 : i32
    return %c0_i32, %c0_i32_0, %c0_i32_1, %c0_i32_2 : i32, i32, i32, i32
  }
  func.func @transform_1(%arg0: i32) -> (i32, i32, i32, i32) {
    %c0_i32 = arith.constant 0 : i32
    %c0_i32_0 = arith.constant 0 : i32
    %c0_i32_1 = arith.constant 0 : i32
    %c0_i32_2 = arith.constant 0 : i32
    %c0_i32_3 = arith.constant 0 : i32
    return %c0_i32, %c0_i32_0, %c0_i32_1, %c0_i32_2 : i32, i32, i32, i32
  }
  func.func @transform_2(%arg0: i32) -> i32 {
    %c0_i32 = arith.constant 0 : i32
    %c0_i32_0 = arith.constant 0 : i32
    return %c0_i32 : i32
  }
  func.func @transform_3(%arg0: i32) -> (i32, i32, i32) {
    %c0_i32 = arith.constant 0 : i32
    %c0_i32_0 = arith.constant 0 : i32
    %c0_i32_1 = arith.constant 0 : i32
    return %arg0, %c0_i32, %c0_i32_0 : i32, i32, i32
  }
  func.func @transform_4(%arg0: i32) -> (i32, i32, i32) {
    %c0_i32 = arith.constant 0 : i32
    %c0_i32_0 = arith.constant 0 : i32
    %c0_i32_1 = arith.constant 0 : i32
    return %arg0, %c0_i32, %c0_i32_0 : i32, i32, i32
  }
}

</mosaic_0001>

<bundles_post_ra>
// kernel: resnet_block.1
= control target key start
LH: loop header
LB: loop body
LE: loop exit
PB: predicated region body
PF: predicated region fallthrough
CT: control target
= control target key end

     0   :  { %s1605_s17 = smov 0   ;;  %s2527_s0 = inlined_call_operand.vmem [shape: f32[9,4,4,1], index: 0, kind: input, shape index: {}]   ;;  %s2528_s1 = inlined_call_operand.vmem [shape: f32[9,4,4,1], index: 1, kind: input, shape index: {}]   ;;  %s2529_s2 = inlined_call_operand.<no memory space> [shape: f32[1], index: 2, kind: input, shape index: {}]   ;;  %s2530_s3 = inlined_call_operand.vmem [shape: f32[2,4,256], index: 3, kind: input, shape index: {}]   ;;  %s2531_s4 = inlined_call_operand.vmem [shape: f32[2,4,256], index: 4, kind: output, shape index: {}]  }
   0x1   :  { %9 = sst [smem:[#allocation2]] %s2529_s2 }
   0x2 LB: > { %s1445_s18 = sadd.s32 4294967295, %s1565_s17   ;;  %p1449_p0 = scmp.ge.s32.totalorder %s1565_s17, 1  ;;  %s1565_s17 = sphi %s1605_s17, %s15_s17  }
   0x3   : > { %p163_p1 = scmp.lt.s32.totalorder %s1565_s17, 3 }
   0x5   : > { %p164_p2 = pnand %p1449_p0, %p163_p1 }
   0x7   : > { %167 = sbr.rel (%p164_p2) target bundleno = 526 (0x20e), region = 36 }
   0xc   : > { %v273_v0 = vld [vmem:[%s2527_s0 + $0x8] sm:$0xf]  ;;  %v271_v1 = vld [vmem:[%s2527_s0] sm:$0xf]  ;;  %p189_p3 = scmp.lt.s32.totalorder %s1445_s18, 1  ;;  %v1567_v2 = vmov 0   ;;  %v200_v53 = vlaneseq }
   0xd   : > { %1557 = vset.pattern.permute.xlu2 %v1567_v2  ;;  %1556 = vset.pattern.permute.xlu1 %v1567_v2  ;;  %v274_v4 = vld [vmem:[%s2527_s0 + $0xc] sm:$0xf]  ;;  %v272_v5 = vld [vmem:[%s2527_s0 + $0x4] sm:$0xf]  ;;  %s1568_s30 = smov 17   ;;  %s1569_s7 = smov 16  }
   0xe   : > { %287 = vperm.xlu2 %1557, %v273_v0   ;;  %277 = vperm.xlu1 %1556, %v271_v1   ;;  %s2583_s18 = smov (!%p189_p3, %s1445_s18), 1  ;;  %v1470_v8 = vld [vmem:[%s2527_s0 + $0x10] sm:$0xf]  ;;  %v1473_v11 = vld [vmem:[%s2527_s0 + $0x1c] sm:$0xf]  ;;  %s1570_s12 = smov 15  }
   0xf   : > { %1558 = vset.pattern.permute.xlu0 %v1567_v2  ;;  %s1536_s22 = sshll.u32 %s2583_s18, 3  ;;  %v1472_v12 = vld [vmem:[%s2527_s0 + $0x18] sm:$0xf]  ;;  %v1471_v15 = vld [vmem:[%s2527_s0 + $0x14] sm:$0xf]  ;;  %s1571_s23 = smov 1  }
  0x10   : > { %s193_s25 = scalar_lea.vmem %s2530_s3, %s1536_s22  ;;  %v1476_v18 = vld [vmem:[%s2527_s0 + $0x28] sm:$0xf]  ;;  %v1474_v19 = vld [vmem:[%s2527_s0 + $0x20] sm:$0xf]  ;;  %v1475_v20 = vld [vmem:[%s2527_s0 + $0x24] sm:$0xf] }
  0x11   : > { %v1627_v3 = vld [vmem:[%s193_s25] sm:$0xff]  ;;  %v1477_v23 = vld [vmem:[%s2527_s0 + $0x2c] sm:$0xf]  ;;  %v1480_v26 = vld [vmem:[%s2527_s0 + $0x38] sm:$0xf]  ;;  %s1572_s15 = smov 127  }
  0x12   : > { %257 = vst [vmem:[#allocation1] ss:$2 sm:$0xff] %v1627_v3  ;;  %v1478_v27 = vld [vmem:[%s2527_s0 + $0x30] sm:$0xf]  ;;  %v1479_v28 = vld [vmem:[%s2527_s0 + $0x34] sm:$0xf] }
  0x13   : > { %497 = vst [vmem:[#allocation1 + $0x10] ss:$2 sm:$0xff] %v1627_v3  ;;  %v1483_v29 = vld [vmem:[%s2527_s0 + $0x44] sm:$0xf]  ;;  %v1481_v32 = vld [vmem:[%s2527_s0 + $0x3c] sm:$0xf] }
  0x14   : > { %501 = vst [vmem:[#allocation1 + $0x20] ss:$2 sm:$0xff] %v1627_v3  ;;  %v1482_v33 = vld [vmem:[%s2527_s0 + $0x40] sm:$0xf]  ;;  %v1484_v34 = vld [vmem:[%s2527_s0 + $0x48] sm:$0xf] }
  0x15   : > { %505 = vst [vmem:[#allocation1 + $0x30] ss:$2 sm:$0xff] %v1627_v3  ;;  %v1485_v35 = vld [vmem:[%s2527_s0 + $0x4c] sm:$0xf]  ;;  %v1487_v36 = vld [vmem:[%s2527_s0 + $0x54] sm:$0xf] }
  0x16   : > { %292 = vperm.xlu2 %1557, %v274_v4   ;;  %282 = vperm.xlu1 %1556, %v272_v5   ;;  %v1486_v39 = vld [vmem:[%s2527_s0 + $0x50] sm:$0xf]  ;;  %s1573_s27 = smov 113   ;;  %v1489_v41 = vld [vmem:[%s2527_s0 + $0x5c] sm:$0xf]  ;;  %s1574_s13 = smov 112  }
  0x17   : > { %v1488_v42 = vld [vmem:[%s2527_s0 + $0x58] sm:$0xf]  ;;  %v1491_v43 = vld [vmem:[%s2527_s0 + $0x64] sm:$0xf]  ;;  %v1333_v44 = vmul.f32 0.1, %v1627_v3 }
  0x18   : > { %v1490_v46 = vld [vmem:[%s2527_s0 + $0x60] sm:$0xf]  ;;  %v1493_v50 = vld [vmem:[%s2527_s0 + $0x6c] sm:$0xf]  ;;  %v1492_v51 = vld [vmem:[%s2527_s0 + $0x68] sm:$0xf] }
  0x19   : > { %v258_v6 = vld.sshfl [vmem:[#allocation1] sm:$0xff pattern:$0x75316420]  ;;  %v259_v7 = vld.sshfl [vmem:[#allocation1 + $0x8] sm:$0xff pattern:$0x75316420] }
  0x1a   : > { %262 = vrot.lane.b32.xlu0 %v258_v6, %s1568_s30  ;;  %303 = vst [vmem:[#allocation1] ss:$2 sm:$0xff] %v1627_v3  ;;  %v1495_v52 = vld [vmem:[%s2527_s0 + $0x74] sm:$0xf]  ;;  %v1494_v55 = vld [vmem:[%s2527_s0 + $0x70] sm:$0xf] }
  0x1b   : > { %v1751_v56 = vand.u32 127, %v200_v53  ;;  %s1575_s26 = smov 111   ;;  %v1497_v60 = vld [vmem:[%s2527_s0 + $0x7c] sm:$0xf]  ;;  %v1496_v61 = vld [vmem:[%s2527_s0 + $0x78] sm:$0xf] }
  0x1c   : > { %v1499_v2 = vld [vmem:[%s2527_s0 + $0x84] sm:$0xf]  ;;  %s2089_s10 = sld [smem:[#allocation2]] }
  0x1d   : > { %v1756_v58 = vadd.s32 128, %v1751_v56  ;;  %v203_v62 = vshra.s32 %v1751_v56, 4  ;;  %v205_v63 = vand.u32 15, %v1751_v56  ;;  %vm266_vm6 = vcmp.lt.s32.totalorder %v1751_v56, 17 }
  0x1e   : > { %324 = vperm.xlu2 %1557, %v1470_v8   ;;  %vm312_vm7 = vcmp.lt.s32.totalorder %v1751_v56, 16  ;;  %vm367_vm12 = vcmp.lt.s32.totalorder %v1751_v56, 15  ;;  %vm422_vm13 = vcmp.lt.s32.totalorder %v1751_v56, 1  ;;  %vm541_vm14 = vcmp.lt.s32.totalorder %v1751_v56, 127 }
  0x1f   : > { %v204_v0 = vshra.s32 %v1756_v58, 4  ;;  %v206_v1 = vand.u32 15, %v1756_v58  ;;  %vm1775_vm0 = vcmp.ge.s32.totalorder %v203_v62, 1  ;;  %vm1779_vm1 = vcmp.ge.s32.totalorder %v205_v63, 1 }
  0x20   : > { %vm215_vm4 = vmand %vm1775_vm0, %vm1779_vm1  ;;  %vm1849_vm8 = vcmp.le.s32.totalorder %v205_v63, 14  ;;  %vm2015_vm15 = vcmp.le.s32.totalorder %v203_v62, 14 }
  0x21   : > { %v305_v9 = vld.sshfl [vmem:[#allocation1 + $0x8] sm:$0xff pattern:$0x75316420]  ;;  %v304_v10 = vld.sshfl [vmem:[#allocation1] sm:$0xff pattern:$0x75316420]  ;;  %vm225_vm10 = vmand %vm1775_vm0, %vm1849_vm8 }
  0x22   : > { %264 = vrot.lane.b32.xlu0 %v259_v7, %s1568_s30  ;;  %310 = vrot.lane.b32.xlu1 %v305_v9, %s1569_s7  ;;  %358 = vst [vmem:[#allocation1] ss:$2 sm:$0xff] %v1627_v3  ;;  %vm1785_vm2 = vcmp.ge.s32.totalorder %v204_v0, 1  ;;  %vm1789_vm3 = vcmp.ge.s32.totalorder %v206_v1, 1  ;;  %vm1857_vm9 = vcmp.le.s32.totalorder %v206_v1, 14 }
  0x23   : > { %vm216_vm5 = vmand %vm1785_vm2, %vm1789_vm3 }
  0x24   : > { %vm226_vm11 = vmand %vm1785_vm2, %vm1857_vm9 }
  0x26   : > { %339 = vperm.xlu2 %1557, %v1473_v11   ;;  %v862_v11 = vld [vmem:[%s2528_s1 + $0x4] sm:$0xf] }
  0x29   : > { %v360_v13 = vld.sshfl [vmem:[#allocation1 + $0x8] sm:$0xff pattern:$0x75316420]  ;;  %v359_v14 = vld.sshfl [vmem:[#allocation1] sm:$0xff pattern:$0x75316420] }
  0x2a   : > { %334 = vperm.xlu1 %1556, %v1472_v12   ;;  %308 = vrot.lane.b32.xlu0 %v304_v10, %s1569_s7  ;;  %413 = vst [vmem:[#allocation1] ss:$2 sm:$0xff] %v1627_v3  ;;  %v1498_v10 = vld [vmem:[%s2527_s0 + $0x80] sm:$0xf]  ;;  %v2532_v12 = vmov 0.0  }
  0x2b   : > { %v2034_v62 = vsel %vm1857_vm9, 1.0, %v2532_v12 }
  0x2c   : > { %2557 = vst [vmem:[#allocation3_spill] sm:$0xff] %v2034_v62 }
  0x2e   : > { %365 = vrot.lane.b32.xlu2 %v360_v13, %s1570_s12  ;;  %v1812_v13 = vsel %vm215_vm4, 1.0, %v2532_v12 }
  0x31   : > { %v415_v16 = vld.sshfl [vmem:[#allocation1 + $0x8] sm:$0xff pattern:$0x75316420]  ;;  %v414_v17 = vld.sshfl [vmem:[#allocation1] sm:$0xff pattern:$0x75316420] }
  0x32   : > { %329 = vperm.xlu0 %1558, %v1471_v15   ;;  %363 = vrot.lane.b32.xlu1 %v359_v14, %s1570_s12  ;;  %493 = vst [vmem:[#allocation1] ss:$2 sm:$0xff] %v1627_v3  ;;  %v1815_v14 = vsel %vm216_vm5, 1.0, %v2532_v12  ;;  %vm596_vm5 = vcmp.lt.s32.totalorder %v1751_v56, 113 }
  0x36   : > { %389 = vperm.xlu2 %1557, %v1476_v18  }
  0x39   : > { %v1670_v21 = vld.sshfl [vmem:[#allocation1] sm:$0xff pattern:$0x75316420]  ;;  %v1672_v22 = vld.sshfl [vmem:[#allocation1 + $0x8] sm:$0xff pattern:$0x75316420] }
  0x3a   : > { %379 = vperm.xlu0 %1558, %v1474_v19   ;;  %384 = vperm.xlu1 %1556, %v1475_v20   ;;  %532 = vst [vmem:[#allocation1] ss:$2 sm:$0xff] %v1627_v3 }
  0x3e   : > { %420 = vrot.lane.b32.xlu2 %v415_v16, %s1571_s23 }
  0x41   : > { %v533_v24 = vld.sshfl [vmem:[#allocation1] sm:$0xff pattern:$0x75316420]  ;;  %v534_v25 = vld.sshfl [vmem:[#allocation1 + $0x8] sm:$0xff pattern:$0x75316420] }
  0x42   : > { %394 = vperm.xlu0 %1558, %v1477_v23   ;;  %418 = vrot.lane.b32.xlu1 %v414_v17, %s1571_s23  ;;  %587 = vst [vmem:[#allocation1] ss:$2 sm:$0xff] %v1627_v3 }
  0x46   : > { %444 = vperm.xlu2 %1557, %v1480_v26  }
  0x49   : > { %v588_v30 = vld.sshfl [vmem:[#allocation1] sm:$0xff pattern:$0x75316420]  ;;  %v589_v31 = vld.sshfl [vmem:[#allocation1 + $0x8] sm:$0xff pattern:$0x75316420] }
  0x4a   : > { %434 = vperm.xlu0 %1558, %v1478_v27   ;;  %439 = vperm.xlu1 %1556, %v1479_v28   ;;  %642 = vst [vmem:[#allocation1] ss:$2 sm:$0xff] %v1627_v3 }
  0x4e   : > { %480 = vperm.xlu2 %1557, %v1483_v29  }
  0x51   : > { %v643_v37 = vld.sshfl [vmem:[#allocation1] sm:$0xff pattern:$0x75316420]  ;;  %v644_v38 = vld.sshfl [vmem:[#allocation1 + $0x8] sm:$0xff pattern:$0x75316420] }
  0x52   : > { %449 = vperm.xlu0 %1558, %v1481_v32   ;;  %475 = vperm.xlu1 %1556, %v1482_v33   ;;  %697 = vst [vmem:[#allocation1] ss:$2 sm:$0xff] %v1627_v3 }
  0x56   : > { %537 = vrot.lane.b32.xlu2 %v533_v24, %s1572_s15  ;;  %v1501_v24 = vld [vmem:[%s2527_s0 + $0x8c] sm:$0xf] }
  0x59   : > { %v698_v47 = vld.sshfl [vmem:[#allocation1] sm:$0xff pattern:$0x75316420]  ;;  %v699_v48 = vld.sshfl [vmem:[#allocation1 + $0x8] sm:$0xff pattern:$0x75316420] }
  0x5a   : > { %485 = vperm.xlu0 %1558, %v1484_v34   ;;  %490 = vperm.xlu1 %1556, %v1485_v35   ;;  %1335 = vst [vmem:[#allocation1] ss:$2 sm:$0xff] %v1333_v44  ;;  %v1503_v34 = vld [vmem:[%s2528_s1 + $0x14] sm:$0xf]  ;;  %v1842_v35 = vsel %vm1775_vm0, 1.0, %v2532_v12  ;;  %vm2021_vm0 = vcmp.le.s32.totalorder %v204_v0, 14 }
  0x5b   : > { %vm240_vm4 = vmand %vm2021_vm0, %vm1789_vm3 }
  0x5e   : > { %558 = vperm.xlu2 %1557, %v1487_v36   ;;  %v1847_v36 = vsel %vm1785_vm2, 1.0, %v2532_v12  ;;  %vm239_vm2 = vmand %vm2015_vm15, %vm1779_vm1 }
  0x62   : > { %553 = vperm.xlu1 %1556, %v1486_v39   ;;  %539 = vrot.lane.b32.xlu0 %v534_v25, %s1572_s15  ;;  %v1500_v25 = vld [vmem:[%s2527_s0 + $0x88] sm:$0xf] }
  0x66   : > { %592 = vrot.lane.b32.xlu2 %v588_v30, %s1573_s27 }
  0x68   : > { %v1716_v40 = vpop.permute.xlu2 %287 }
  0x6a   : > { %568 = vperm.xlu1 %1556, %v1489_v41   ;;  %563 = vperm.xlu0 %1558, %v1488_v42  }
  0x6e   : > { %613 = vperm.xlu2 %1557, %v1491_v43  }
  0x70   : > { %v1728_v45 = vpop.permute.xlu2 %292 }
  0x72   : > { %608 = vperm.xlu1 %1556, %v1490_v46   ;;  %594 = vrot.lane.b32.xlu0 %v589_v31, %s1573_s27  ;;  %v861_v46 = vld [vmem:[%s2528_s1] sm:$0xf] }
  0x76   : > { %647 = vrot.lane.b32.xlu2 %v643_v37, %s1574_s13 }
  0x78   : > { %v1735_v49 = vpop.permute.xlu2 %324 }
  0x7a   : > { %623 = vperm.xlu1 %1556, %v1493_v50   ;;  %618 = vperm.xlu0 %1558, %v1492_v51  }
  0x7e   : > { %668 = vperm.xlu2 %1557, %v1495_v52  }
  0x80   : > { %v1746_v54 = vpop.permute.xlu2 %339  ;;  %v278_v57 = vpop.permute.xlu1 %277 }
  0x82   : > { %663 = vperm.xlu1 %1556, %v1494_v55   ;;  %649 = vrot.lane.b32.xlu0 %v644_v38, %s1574_s13 }
  0x86   : > { %702 = vrot.lane.b32.xlu2 %v698_v47, %s1575_s26  ;;  %v863_v47 = vld [vmem:[%s2528_s1 + $0x8] sm:$0xf] }
  0x88   : > { %v1758_v59 = vpop.permute.xlu2 %365  ;;  %v283_v3 = vpop.permute.xlu1 %282 }
  0x8a   : > { %678 = vperm.xlu1 %1556, %v1497_v60   ;;  %673 = vperm.xlu0 %1558, %v1496_v61   ;;  %v1507_v60 = vld [vmem:[%s2528_s1 + $0x24] sm:$0xf] }
  0x8c   : > { %v263_v4 = vpop.permute.xlu0 %262 }
  0x8e   : > { %723 = vperm.xlu2 %1557, %v1499_v2  }
  0x90   : > { %v1793_v9 = vpop.permute.xlu2 %389 }
  0x92   : > { %718 = vperm.xlu1 %1556, %v1498_v10   ;;  %704 = vrot.lane.b32.xlu0 %v699_v48, %s1575_s26 }
  0x94   : > { %v265_v15 = vpop.permute.xlu0 %264  ;;  %v311_v16 = vpop.permute.xlu1 %310 }
  0x95   : > { %v267_v17 = vsel %vm266_vm6, %v263_v4, %v265_v15  ;;  %v268_v18 = vsel %vm266_vm6, %v265_v15, %v263_v4 }
  0x96   : > { %872 = vperm.xlu2 %1557, %v862_v11   ;;  %v269_v19 = vmul.f32 %v1812_v13, %v268_v18  ;;  %v270_v20 = vmul.f32 %v1815_v14, %v267_v17 }
  0x98   : > { %v1823_v23 = vpop.permute.xlu2 %420  ;;  %v299_v26 = vmul.f32 %v1716_v40, %v269_v19  ;;  %v300_v27 = vmul.f32 %v1716_v40, %v270_v20  ;;  %v297_v28 = vmul.f32 %v283_v3, %v269_v19  ;;  %v298_v29 = vmul.f32 %v283_v3, %v270_v20 }
  0x99   : > { %v295_v30 = vmul.f32 %v278_v57, %v269_v19  ;;  %v296_v31 = vmul.f32 %v278_v57, %v270_v20  ;;  %v301_v32 = vmul.f32 %v1728_v45, %v269_v19  ;;  %v302_v33 = vmul.f32 %v1728_v45, %v270_v20 }
  0x9a   : > { %733 = vperm.xlu1 %1556, %v1501_v24   ;;  %728 = vperm.xlu0 %1558, %v1500_v25   ;;  %v1885_v57 = vsel %vm225_vm10, 1.0, %v2532_v12  ;;  %v864_v24 = vld [vmem:[%s2528_s1 + $0xc] sm:$0xf]  ;;  %v1504_v25 = vld [vmem:[%s2528_s1 + $0x18] sm:$0xf]  ;;  %vm250_vm10 = vmand %vm2021_vm0, %vm1857_vm9 }
  0x9c   : > { %v335_v37 = vpop.permute.xlu1 %334  ;;  %v309_v38 = vpop.permute.xlu0 %308 }
  0x9d   : > { %v313_v40 = vsel %vm312_vm7, %v309_v38, %v311_v16  ;;  %v314_v41 = vsel %vm312_vm7, %v311_v16, %v309_v38 }
  0x9e   : > { %913 = vperm.xlu2 %1557, %v1503_v34   ;;  %v315_v43 = vmul.f32 %v1842_v35, %v314_v41  ;;  %v316_v44 = vmul.f32 %v1847_v36, %v313_v40 }
  0xa0   : > { %v1863_v45 = vpop.permute.xlu2 %444  ;;  %v346_v48 = vmul.f32 %v335_v37, %v315_v43  ;;  %v347_v50 = vmul.f32 %v335_v37, %v316_v44  ;;  %v342_v51 = vmul.f32 %v1735_v49, %v315_v43  ;;  %v343_v52 = vmul.f32 %v1735_v49, %v316_v44 }
  0xa1   : > { %v348_v53 = vmul.f32 %v1746_v54, %v315_v43  ;;  %v349_v55 = vmul.f32 %v1746_v54, %v316_v44  ;;  %v1891_v49 = vsel %vm226_vm11, 1.0, %v2532_v12  ;;  %vm2536_vm11 = vcmp.lt.s32.totalorder %v1751_v56, 111 }
  0xa2   : > { %867 = vperm.xlu1 %1556, %v861_v46   ;;  %877 = vperm.xlu0 %1558, %v863_v47   ;;  %v350_v61 = vadd.f32 %v342_v51, %v295_v30  ;;  %v351_v63 = vadd.f32 %v343_v52, %v296_v31  ;;  %v354_v1 = vadd.f32 %v346_v48, %v299_v26  ;;  %v1508_v46 = vld [vmem:[%s2528_s1 + $0x28] sm:$0xf]  ;;  %v1514_v47 = vld [vmem:[%s2528_s1 + $0x40] sm:$0xf]  ;;  %v1929_v48 = vsel %vm1779_vm1, 1.0, %v2532_v12  ;;  %vm249_vm1 = vmand %vm2015_vm15, %vm1849_vm8 }
  0xa3   : > { %v356_v2 = vadd.f32 %v348_v53, %v301_v32  ;;  %v357_v3 = vadd.f32 %v349_v55, %v302_v33  ;;  %v355_v4 = vadd.f32 %v347_v50, %v300_v27  ;;  %v1511_v27 = vld [vmem:[%s2528_s1 + $0x34] sm:$0xf]  ;;  %v1934_v50 = vsel %vm1789_vm3, 1.0, %v2532_v12 }
  0xa4   : > { %v330_v5 = vpop.permute.xlu0 %329  ;;  %v364_v54 = vpop.permute.xlu1 %363  ;;  %vm651_vm3 = vcmp.lt.s32.totalorder %v1751_v56, 112 }
  0xa5   : > { %v344_v7 = vmul.f32 %v330_v5, %v315_v43  ;;  %v345_v10 = vmul.f32 %v330_v5, %v316_v44  ;;  %v368_v11 = vsel %vm367_vm12, %v364_v54, %v1758_v59  ;;  %v369_v15 = vsel %vm367_vm12, %v1758_v59, %v364_v54  ;;  %v1502_v44 = vld [vmem:[%s2528_s1 + $0x10] sm:$0xf] }
  0xa6   : > { %962 = vperm.xlu2 %1557, %v1507_v60   ;;  %v370_v16 = vmul.f32 %v1885_v57, %v369_v15  ;;  %v371_v17 = vmul.f32 %v1891_v49, %v368_v11 }
  0xa7   : > { %v352_v18 = vadd.f32 %v344_v7, %v297_v28  ;;  %v353_v19 = vadd.f32 %v345_v10, %v298_v29  ;;  %v1505_v7 = vld [vmem:[%s2528_s1 + $0x1c] sm:$0xf]  ;;  %v1512_v10 = vld [vmem:[%s2528_s1 + $0x38] sm:$0xf] }
  0xa8   : > { %v1901_v20 = vpop.permute.xlu2 %480  ;;  %v401_v26 = vmul.f32 %v1793_v9, %v370_v16  ;;  %v402_v59 = vmul.f32 %v1793_v9, %v371_v17 }
  0xaa   : > { %882 = vperm.xlu1 %1556, %v864_v24   ;;  %918 = vperm.xlu0 %1558, %v1504_v25   ;;  %v409_v28 = vadd.f32 %v401_v26, %v354_v1  ;;  %v410_v29 = vadd.f32 %v402_v59, %v355_v4 }
  0xac   : > { %v380_v30 = vpop.permute.xlu0 %379  ;;  %v385_v31 = vpop.permute.xlu1 %384 }
  0xad   : > { %v397_v32 = vmul.f32 %v380_v30, %v370_v16  ;;  %v398_v33 = vmul.f32 %v380_v30, %v371_v17  ;;  %v399_v34 = vmul.f32 %v385_v31, %v370_v16  ;;  %v400_v37 = vmul.f32 %v385_v31, %v371_v17  ;;  %v1518_v31 = vld [vmem:[%s2528_s1 + $0x50] sm:$0xf] }
  0xae   : > { %1011 = vperm.xlu2 %1557, %v1511_v27  }
  0xaf   : > { %v405_v38 = vadd.f32 %v397_v32, %v350_v61  ;;  %v406_v40 = vadd.f32 %v398_v33, %v351_v63  ;;  %v407_v41 = vadd.f32 %v399_v34, %v352_v18  ;;  %v408_v43 = vadd.f32 %v400_v37, %v353_v19 }
  0xb0   : > { %v1914_v9 = vpop.permute.xlu2 %537 }
  0xb2   : > { %908 = vperm.xlu1 %1556, %v1502_v44   ;;  %967 = vperm.xlu0 %1558, %v1508_v46  }
  0xb4   : > { %v395_v51 = vpop.permute.xlu0 %394  ;;  %v419_v52 = vpop.permute.xlu1 %418 }
  0xb5   : > { %v403_v53 = vmul.f32 %v395_v51, %v370_v16  ;;  %v404_v55 = vmul.f32 %v395_v51, %v371_v17  ;;  %v423_v60 = vsel %vm422_vm13, %v419_v52, %v1823_v23  ;;  %v424_v61 = vsel %vm422_vm13, %v1823_v23, %v419_v52  ;;  %v1510_v51 = vld [vmem:[%s2528_s1 + $0x30] sm:$0xf] }
  0xb6   : > { %1047 = vperm.xlu2 %1557, %v1514_v47   ;;  %v425_v63 = vmul.f32 %v1929_v48, %v424_v61  ;;  %v426_v1 = vmul.f32 %v1934_v50, %v423_v60  ;;  %v1513_v60 = vld [vmem:[%s2528_s1 + $0x3c] sm:$0xf] }
  0xb7   : > { %v411_v4 = vadd.f32 %v403_v53, %v356_v2  ;;  %v412_v5 = vadd.f32 %v404_v55, %v357_v3  ;;  %v1517_v2 = vld [vmem:[%s2528_s1 + $0x4c] sm:$0xf] }
  0xb8   : > { %v1944_v54 = vpop.permute.xlu2 %558  ;;  %v456_v11 = vmul.f32 %v1863_v45, %v425_v63  ;;  %v457_v23 = vmul.f32 %v1863_v45, %v426_v1 }
  0xba   : > { %923 = vperm.xlu1 %1556, %v1505_v7   ;;  %1016 = vperm.xlu0 %1558, %v1512_v10   ;;  %v1957_v3 = vadd.f32 %v456_v11, %v409_v28  ;;  %v1959_v15 = vadd.f32 %v457_v23, %v410_v29  ;;  %v1506_v28 = vld [vmem:[%s2528_s1 + $0x20] sm:$0xf]  ;;  %v1515_v29 = vld [vmem:[%s2528_s1 + $0x44] sm:$0xf] }
  0xbc   : > { %v435_v16 = vpop.permute.xlu0 %434  ;;  %v440_v17 = vpop.permute.xlu1 %439 }
  0xbd   : > { %v452_v18 = vmul.f32 %v435_v16, %v425_v63  ;;  %v453_v19 = vmul.f32 %v435_v16, %v426_v1  ;;  %v454_v24 = vmul.f32 %v440_v17, %v425_v63  ;;  %v455_v25 = vmul.f32 %v440_v17, %v426_v1  ;;  %v499_v17 = vld.sshfl [vmem:[#allocation1 + $0x18] sm:$0xff pattern:$0x75316420] }
  0xbe   : > { %1062 = vperm.xlu2 %1557, %v1517_v2   ;;  %v498_v2 = vld.sshfl [vmem:[#allocation1 + $0x10] sm:$0xff pattern:$0x75316420] }
  0xbf   : > { %v1961_v26 = vadd.f32 %v452_v18, %v405_v38  ;;  %v1963_v45 = vadd.f32 %v453_v19, %v406_v40  ;;  %v462_v59 = vadd.f32 %v454_v24, %v407_v41  ;;  %v463_v27 = vadd.f32 %v455_v25, %v408_v43  ;;  %v1509_v43 = vld [vmem:[%s2528_s1 + $0x2c] sm:$0xf] }
  0xc0   : > { %v1965_v30 = vpop.permute.xlu2 %592  ;;  %v518_v19 = vmul.f32 %v498_v2, %v1901_v20  ;;  %v2029_v24 = vsel %vm1849_vm8, 1.0, %v2532_v12  ;;  %vm842_vm8 = vcmask 1041409  }
  0xc2   : > { %957 = vperm.xlu1 %1556, %v1506_v28   ;;  %1052 = vperm.xlu0 %1558, %v1515_v29   ;;  %v519_v29 = vmul.f32 %v499_v17, %v1901_v20 }
  0xc4   : > { %v450_v32 = vpop.permute.xlu0 %449  ;;  %v476_v33 = vpop.permute.xlu1 %475 }
  0xc5   : > { %v458_v34 = vmul.f32 %v450_v32, %v425_v63  ;;  %v459_v37 = vmul.f32 %v450_v32, %v426_v1  ;;  %v516_v25 = vmul.f32 %v1670_v21, %v476_v33  ;;  %v517_v58 = vmul.f32 %v1672_v22, %v476_v33  ;;  %v503_v32 = vld.sshfl [vmem:[#allocation1 + $0x28] sm:$0xff pattern:$0x75316420]  ;;  %v506_v33 = vld.sshfl [vmem:[#allocation1 + $0x30] sm:$0xff pattern:$0x75316420] }
  0xc6   : > { %1096 = vperm.xlu2 %1557, %v1518_v31   ;;  %v502_v31 = vld.sshfl [vmem:[#allocation1 + $0x20] sm:$0xff pattern:$0x75316420]  ;;  %v526_v22 = vadd.f32 %v518_v19, %v462_v59  ;;  %v2066_v59 = vsel %vm239_vm2, 1.0, %v2532_v12  ;;  %vm2535_vm2 = vcmask 1043456  }
  0xc7   : > { %v1976_v38 = vadd.f32 %v458_v34, %v411_v4  ;;  %v1978_v40 = vadd.f32 %v459_v37, %v412_v5  ;;  %v1516_v4 = vld [vmem:[%s2528_s1 + $0x48] sm:$0xf]  ;;  %v527_v37 = vadd.f32 %v519_v29, %v463_v27  ;;  %v524_v8 = vadd.f32 %v516_v25, %v1961_v26 }
  0xc8   : > { %v1980_v41 = vpop.permute.xlu2 %613  ;;  %v525_v20 = vadd.f32 %v517_v58, %v1963_v45  ;;  %v2069_v27 = vsel %vm240_vm4, 1.0, %v2532_v12  ;;  %v2081_v45 = vsel %vm2015_vm15, 1.0, %v2532_v12 }
  0xca   : > { %972 = vperm.xlu1 %1556, %v1509_v43   ;;  %v507_v43 = vld.sshfl [vmem:[#allocation1 + $0x38] sm:$0xff pattern:$0x75316420] }
  0xcc   : > { %v486_v44 = vpop.permute.xlu0 %485  ;;  %v491_v46 = vpop.permute.xlu1 %490 }
  0xcd   : > { %v522_v2 = vmul.f32 %v506_v33, %v491_v46  ;;  %v523_v17 = vmul.f32 %v507_v43, %v491_v46  ;;  %v2087_v46 = vsel %vm2021_vm0, 1.0, %v2532_v12 }
  0xd0   : > { %v1985_v47 = vpop.permute.xlu2 %647 }
  0xd2   : > { %1006 = vperm.xlu1 %1556, %v1510_v51  }
  0xd4   : > { %v554_v52 = vpop.permute.xlu1 %553  ;;  %v540_v53 = vpop.permute.xlu0 %539 }
  0xd5   : > { %v542_v0 = vsel %vm541_vm14, %v1914_v9, %v540_v53  ;;  %v543_v28 = vsel %vm541_vm14, %v540_v53, %v1914_v9 }
  0xd6   : > { %v544_v51 = vmul.f32 %v2029_v24, %v542_v0  ;;  %v545_v53 = vmul.f32 %v2034_v62, %v543_v28 }
  0xd8   : > { %v1990_v55 = vpop.permute.xlu2 %668  ;;  %v571_v19 = vmul.f32 %v554_v52, %v544_v51  ;;  %v572_v25 = vmul.f32 %v554_v52, %v545_v53  ;;  %v574_v58 = vmul.f32 %v1944_v54, %v545_v53 }
  0xda   : > { %1021 = vperm.xlu1 %1556, %v1513_v60   ;;  %v520_v60 = vmul.f32 %v502_v31, %v486_v44 }
  0xdc   : > { %v1995_v61 = vpop.permute.xlu1 %568  ;;  %v1997_v63 = vpop.permute.xlu0 %563  ;;  %v528_v0 = vadd.f32 %v520_v60, %v1957_v3 }
  0xdd   : > { %v575_v33 = vmul.f32 %v1997_v63, %v544_v51  ;;  %v576_v43 = vmul.f32 %v1997_v63, %v545_v53 }
  0xe0   : > { %v1999_v1 = vpop.permute.xlu2 %702 }
  0xe2   : > { %1057 = vperm.xlu1 %1556, %v1516_v4   ;;  %v521_v4 = vmul.f32 %v503_v32, %v486_v44  ;;  %v573_v44 = vmul.f32 %v1944_v54, %v544_v51  ;;  %v530_v54 = vadd.f32 %v522_v2, %v1976_v38  ;;  %v578_v32 = vmul.f32 %v1995_v61, %v545_v53 }
  0xe3   : > { %v582_v38 = vadd.f32 %v574_v58, %v527_v37  ;;  %v583_v37 = vadd.f32 %v575_v33, %v528_v0 }
  0xe4   : > { %v2004_v5 = vpop.permute.xlu1 %608  ;;  %v595_v7 = vpop.permute.xlu0 %594  ;;  %v529_v28 = vadd.f32 %v521_v4, %v1959_v15  ;;  %v580_v4 = vadd.f32 %v572_v25, %v525_v20 }
  0xe5   : > { %v597_v26 = vsel %vm596_vm5, %v1965_v30, %v595_v7  ;;  %v598_v6 = vsel %vm596_vm5, %v595_v7, %v1965_v30  ;;  %v577_v30 = vmul.f32 %v1995_v61, %v544_v51 }
  0xe6   : > { %v599_v29 = vmul.f32 %v2066_v59, %v597_v26  ;;  %v600_v31 = vmul.f32 %v2069_v27, %v598_v6  ;;  %v581_v26 = vadd.f32 %v573_v44, %v526_v22 }
  0xe7   : > { %v585_v61 = vadd.f32 %v577_v30, %v530_v54 }
  0xe8   : > { %v2006_v10 = vpop.permute.xlu2 %723  ;;  %v626_v63 = vmul.f32 %v2004_v5, %v599_v29  ;;  %v628_v51 = vmul.f32 %v1980_v41, %v599_v29  ;;  %v629_v53 = vmul.f32 %v1980_v41, %v600_v31  ;;  %v2558_v41 = vmov 0.0  }
  0xe9   : > { %v2136_v42 = vsel %vm249_vm1, 1.0, %v2558_v41  ;;  %v2139_v18 = vsel %vm250_vm10, 1.0, %v2558_v41  ;;  %vm844_vm1 = vcmask 1042434  }
  0xea   : > { %2559 = vst [vmem:[#allocation4_spill] sm:$0xff] %v2136_v42  ;;  %v636_v25 = vadd.f32 %v628_v51, %v581_v26  ;;  %v637_v44 = vadd.f32 %v629_v53, %v582_v38 }
  0xeb   : > { %2560 = vst [vmem:[#allocation5_spill] sm:$0xff] %v2139_v18 }
  0xec   : > { %v2008_v11 = vpop.permute.xlu1 %623  ;;  %v2010_v23 = vpop.permute.xlu0 %618 }
  0xed   : > { %v632_v58 = vmul.f32 %v2008_v11, %v599_v29  ;;  %v633_v30 = vmul.f32 %v2008_v11, %v600_v31  ;;  %v631_v16 = vmul.f32 %v2010_v23, %v600_v31 }
  0xf0   : > { %v2053_v21 = vpop.permute.xlu2 %872 }
  0xf4   : > { %v664_v34 = vpop.permute.xlu1 %663  ;;  %v650_v9 = vpop.permute.xlu0 %649 }
  0xf5   : > { %v652_v7 = vsel %vm651_vm3, %v1985_v47, %v650_v9  ;;  %v653_v52 = vsel %vm651_vm3, %v650_v9, %v1985_v47  ;;  %v531_v47 = vadd.f32 %v523_v17, %v1978_v40  ;;  %v579_v9 = vadd.f32 %v571_v19, %v524_v8 }
  0xf6   : > { %v654_v3 = vmul.f32 %v2081_v45, %v652_v7  ;;  %v655_v15 = vmul.f32 %v2087_v46, %v653_v52  ;;  %v627_v40 = vmul.f32 %v2004_v5, %v600_v31  ;;  %v584_v8 = vadd.f32 %v576_v43, %v529_v28 }
  0xf7   : > { %v586_v22 = vadd.f32 %v578_v32, %v531_v47  ;;  %v2126_v17 = vstv %s2089_s10  ;;  %v634_v19 = vadd.f32 %v626_v63, %v579_v9 }
  0xf8   : > { %v2110_v60 = vpop.permute.xlu2 %913  ;;  %v681_v20 = vmul.f32 %v664_v34, %v654_v3  ;;  %v682_v2 = vmul.f32 %v664_v34, %v655_v15  ;;  %v683_v5 = vmul.f32 %v1990_v55, %v654_v3  ;;  %v684_v6 = vmul.f32 %v1990_v55, %v655_v15 }
  0xf9   : > { %v635_v34 = vadd.f32 %v627_v40, %v580_v4  ;;  %v630_v55 = vmul.f32 %v2010_v23, %v599_v29  ;;  %v640_v40 = vadd.f32 %v632_v58, %v585_v61  ;;  %v639_v53 = vadd.f32 %v631_v16, %v584_v8 }
  0xfa   : > { %v689_v52 = vadd.f32 %v681_v20, %v634_v19  ;;  %v691_v32 = vadd.f32 %v683_v5, %v636_v25  ;;  %v692_v33 = vadd.f32 %v684_v6, %v637_v44 }
  0xfb   : > { %v690_v0 = vadd.f32 %v682_v2, %v635_v34  ;;  %v638_v51 = vadd.f32 %v630_v55, %v583_v37 }
  0xfc   : > { %v679_v12 = vpop.permute.xlu1 %678  ;;  %v674_v62 = vpop.permute.xlu0 %673 }
  0xfd   : > { %v687_v43 = vmul.f32 %v679_v12, %v654_v3  ;;  %v688_v23 = vmul.f32 %v679_v12, %v655_v15  ;;  %v685_v31 = vmul.f32 %v674_v62, %v654_v3  ;;  %v686_v47 = vmul.f32 %v674_v62, %v655_v15 }
  0xff   : > { %v695_v41 = vadd.f32 %v687_v43, %v640_v40  ;;  %v693_v3 = vadd.f32 %v685_v31, %v638_v51  ;;  %v694_v62 = vadd.f32 %v686_v47, %v639_v53 }
 0x100   : > { %v2153_v9 = vpop.permute.xlu2 %962 }
 0x104   : > { %v719_v7 = vpop.permute.xlu1 %718  ;;  %v705_v39 = vpop.permute.xlu0 %704 }
 0x105   : > { %v707_v28 = vsel %vm2536_vm11, %v1999_v1, %v705_v39  ;;  %v708_v54 = vsel %vm2536_vm11, %v705_v39, %v1999_v1  ;;  %v641_v1 = vadd.f32 %v633_v30, %v586_v22 }
 0x106   : > { %v709_v11 = vmul.f32 %v2136_v42, %v707_v28  ;;  %v710_v29 = vmul.f32 %v2139_v18, %v708_v54 }
 0x107   : > { %v696_v12 = vadd.f32 %v688_v23, %v641_v1 }
 0x108   : > { %v736_v4 = vmul.f32 %v719_v7, %v709_v11  ;;  %v737_v26 = vmul.f32 %v719_v7, %v710_v29  ;;  %v738_v38 = vmul.f32 %v2006_v10, %v709_v11  ;;  %v739_v63 = vmul.f32 %v2006_v10, %v710_v29 }
 0x10a   : > { %v744_v20 = vadd.f32 %v736_v4, %v689_v52  ;;  %v745_v2 = vadd.f32 %v737_v26, %v690_v0  ;;  %v746_v5 = vadd.f32 %v738_v38, %v691_v32  ;;  %v747_v6 = vadd.f32 %v739_v63, %v692_v33  ;;  %v2161_v4 = vpop.permute.xlu2 %1011 }
 0x10c   : > { %v753_v15 = vsel %vm2535_vm2, %v744_v20, 0.0  ;;  %v760_v19 = vsel %vm2535_vm2, %v745_v2, 0.0  ;;  %v767_v34 = vsel %vm2535_vm2, %v746_v5, 0.0  ;;  %v774_v10 = vsel %vm2535_vm2, %v747_v6, 0.0  ;;  %v734_v61 = vpop.permute.xlu1 %733  ;;  %v729_v22 = vpop.permute.xlu0 %728 }
 0x10d   : > { %v754_v37 = vrot.slane %v753_v15, 4  ;;  %v761_v8 = vrot.slane %v760_v19, 4  ;;  %v768_v25 = vrot.slane %v767_v34, 4  ;;  %v775_v44 = vrot.slane %v774_v10, 4 }
 0x10e   : > { %v742_v58 = vmul.f32 %v734_v61, %v709_v11  ;;  %v743_v30 = vmul.f32 %v734_v61, %v710_v29  ;;  %v740_v55 = vmul.f32 %v729_v22, %v709_v11  ;;  %v741_v16 = vmul.f32 %v729_v22, %v710_v29 }
 0x10f   : > { %v755_v7 = vadd.f32 %v754_v37, %v753_v15  ;;  %v762_v39 = vadd.f32 %v761_v8, %v760_v19  ;;  %v769_v52 = vadd.f32 %v768_v25, %v767_v34  ;;  %v776_v0 = vadd.f32 %v775_v44, %v774_v10 }
 0x110   : > { %v750_v28 = vadd.f32 %v742_v58, %v695_v41  ;;  %v751_v54 = vadd.f32 %v743_v30, %v696_v12  ;;  %v748_v32 = vadd.f32 %v740_v55, %v693_v3  ;;  %v749_v33 = vadd.f32 %v741_v16, %v694_v62 }
 0x111   : > { %v756_v43 = vrot.slane %v755_v7, 2  ;;  %v763_v23 = vrot.slane %v762_v39, 2  ;;  %v770_v31 = vrot.slane %v769_v52, 2  ;;  %v777_v47 = vrot.slane %v776_v0, 2 }
 0x112   : > { %v795_v26 = vsel %vm2535_vm2, %v750_v28, 0.0  ;;  %v802_v38 = vsel %vm2535_vm2, %v751_v54, 0.0  ;;  %v781_v11 = vsel %vm2535_vm2, %v748_v32, 0.0  ;;  %v788_v29 = vsel %vm2535_vm2, %v749_v33, 0.0  ;;  %v2171_v54 = vpop.permute.xlu2 %1047 }
 0x113   : > { %v757_v63 = vadd.f32 %v756_v43, %v755_v7  ;;  %v764_v40 = vadd.f32 %v763_v23, %v762_v39  ;;  %v771_v1 = vadd.f32 %v770_v31, %v769_v52  ;;  %v778_v51 = vadd.f32 %v777_v47, %v776_v0 }
 0x114   : > { %v796_v53 = vrot.slane %v795_v26, 4  ;;  %v803_v20 = vrot.slane %v802_v38, 4  ;;  %v782_v2 = vrot.slane %v781_v11, 4  ;;  %v789_v5 = vrot.slane %v788_v29, 4 }
 0x115   : > { %v758_v6 = vrot.slane %v757_v63, 1  ;;  %v765_v41 = vrot.slane %v764_v40, 1  ;;  %v772_v12 = vrot.slane %v771_v1, 1  ;;  %v779_v3 = vrot.slane %v778_v51, 1 }
 0x116   : > { %v797_v62 = vadd.f32 %v796_v53, %v795_v26  ;;  %v804_v15 = vadd.f32 %v803_v20, %v802_v38  ;;  %v783_v19 = vadd.f32 %v782_v2, %v781_v11  ;;  %v790_v34 = vadd.f32 %v789_v5, %v788_v29 }
 0x117   : > { %v759_v10 = vadd.f32 %v758_v6, %v757_v63  ;;  %v766_v61 = vadd.f32 %v765_v41, %v764_v40  ;;  %v773_v22 = vadd.f32 %v772_v12, %v771_v1  ;;  %v780_v37 = vadd.f32 %v779_v3, %v778_v51 }
 0x118   : > { %v798_v8 = vrot.slane %v797_v62, 2  ;;  %v805_v25 = vrot.slane %v804_v15, 2  ;;  %v784_v44 = vrot.slane %v783_v19, 2  ;;  %v791_v58 = vrot.slane %v790_v34, 2 }
 0x119   : > { %v818_v30 = vmul.f32 %v2126_v17, %v759_v10  ;;  %v819_v55 = vmul.f32 %v2126_v17, %v766_v61  ;;  %v820_v16 = vmul.f32 %v2126_v17, %v773_v22  ;;  %v821_v7 = vmul.f32 %v2126_v17, %v780_v37 }
 0x11a   : > { %v799_v39 = vadd.f32 %v798_v8, %v797_v62  ;;  %v806_v52 = vadd.f32 %v805_v25, %v804_v15  ;;  %v785_v0 = vadd.f32 %v784_v44, %v783_v19  ;;  %v792_v28 = vadd.f32 %v791_v58, %v790_v34  ;;  %v2229_v8 = vpop.permute.xlu1 %867  ;;  %v1525_v25 = vld [vmem:[%s2528_s1 + $0x6c] sm:$0xf]  ;;  %v1519_v44 = vld [vmem:[%s2528_s1 + $0x54] sm:$0xf]  ;;  %v1522_v58 = vld [vmem:[%s2528_s1 + $0x60] sm:$0xf] }
 0x11b   : > { %vm809_vm9 = vcmp.gt.f32.partialorder %v759_v10, 0.0  ;;  %vm810_vm15 = vcmp.gt.f32.partialorder %v766_v61, 0.0  ;;  %vm811_vm0 = vcmp.gt.f32.partialorder %v773_v22, 0.0  ;;  %vm812_vm4 = vcmp.gt.f32.partialorder %v780_v37, 0.0 }
 0x11c   : > { %v800_v32 = vrot.slane %v799_v39, 1  ;;  %v807_v33 = vrot.slane %v806_v52, 1  ;;  %v786_v43 = vrot.slane %v785_v0, 1  ;;  %v793_v23 = vrot.slane %v792_v28, 1 }
 0x11d   : > { %v826_v31 = vsel %vm809_vm9, %v759_v10, %v818_v30  ;;  %v827_v47 = vsel %vm810_vm15, %v766_v61, %v819_v55  ;;  %v828_v26 = vsel %vm811_vm0, %v773_v22, %v820_v16  ;;  %v829_v38 = vsel %vm812_vm4, %v780_v37, %v821_v7  ;;  %v2187_v10 = vpop.permute.xlu2 %1062  ;;  %v1520_v22 = vld [vmem:[%s2528_s1 + $0x58] sm:$0xf]  ;;  %v1521_v37 = vld [vmem:[%s2528_s1 + $0x5c] sm:$0xf]  ;;  %v1531_v55 = vld [vmem:[%s2528_s1 + $0x84] sm:$0xf] }
 0x11e   : > { %v801_v11 = vadd.f32 %v800_v32, %v799_v39  ;;  %v808_v29 = vadd.f32 %v807_v33, %v806_v52  ;;  %v787_v63 = vadd.f32 %v786_v43, %v785_v0  ;;  %v794_v40 = vadd.f32 %v793_v23, %v792_v28  ;;  %v1532_v16 = vld [vmem:[%s2528_s1 + $0x88] sm:$0xf]  ;;  %v1523_v39 = vld [vmem:[%s2528_s1 + $0x64] sm:$0xf]  ;;  %v1526_v0 = vld [vmem:[%s2528_s1 + $0x70] sm:$0xf]  ;;  %v2263_v32 = vpop.permute.xlu0 %877 }
 0x11f   : > { %v843_v1 = vsel %vm842_vm8, %v828_v26, %v826_v31  ;;  %v848_v51 = vsel %vm842_vm8, %v829_v38, %v827_v47  ;;  %vm846_vm15 = vcmask 1043459   ;;  %v1524_v52 = vld [vmem:[%s2528_s1 + $0x68] sm:$0xf]  ;;  %v1527_v33 = vld [vmem:[%s2528_s1 + $0x74] sm:$0xf] }
 0x120   : > { %vm815_vm10 = vcmp.gt.f32.partialorder %v801_v11, 0.0  ;;  %vm816_vm2 = vcmp.gt.f32.partialorder %v808_v29, 0.0  ;;  %v824_v53 = vmul.f32 %v2126_v17, %v801_v11  ;;  %v825_v20 = vmul.f32 %v2126_v17, %v808_v29  ;;  %v1529_v43 = vld [vmem:[%s2528_s1 + $0x7c] sm:$0xf]  ;;  %v1528_v47 = vld [vmem:[%s2528_s1 + $0x78] sm:$0xf] }
 0x121   : > { %vm813_vm11 = vcmp.gt.f32.partialorder %v787_v63, 0.0  ;;  %vm814_vm9 = vcmp.gt.f32.partialorder %v794_v40, 0.0  ;;  %v822_v2 = vmul.f32 %v2126_v17, %v787_v63  ;;  %v823_v5 = vmul.f32 %v2126_v17, %v794_v40  ;;  %v1533_v26 = vld [vmem:[%s2528_s1 + $0x8c] sm:$0xf] }
 0x122   : > { %v832_v6 = vsel %vm815_vm10, %v801_v11, %v824_v53  ;;  %v833_v41 = vsel %vm816_vm2, %v808_v29, %v825_v20  ;;  %v2240_v30 = vpop.permute.xlu1 %882  ;;  %v1530_v29 = vld [vmem:[%s2528_s1 + $0x80] sm:$0xf] }
 0x123   : > { %v830_v12 = vsel %vm813_vm11, %v787_v63, %v822_v2  ;;  %v831_v3 = vsel %vm814_vm9, %v794_v40, %v823_v5 }
 0x124   : > { %v845_v62 = vsel %vm844_vm1, %v830_v12, %v843_v1  ;;  %v849_v15 = vsel %vm844_vm1, %v831_v3, %v848_v51 }
 0x125   : > { %v2182_v19 = vsel %vm846_vm15, %v832_v6, %v845_v62  ;;  %v2185_v34 = vsel %vm846_vm15, %v833_v41, %v849_v15  ;;  %v2279_v38 = vpop.permute.xlu2 %1096 }
 0x126   : > { %v2191_v17 = vmul.f32 %v2171_v54, %v2185_v34  ;;  %v2195_v61 = vmul.f32 %v2187_v10, %v2185_v34  ;;  %1083 = vrot.lane.b32.xlu1 %v2185_v34, %s1572_s15  ;;  %855 = vrot.lane.b32.xlu0 %v2185_v34, %s1568_s30  ;;  %v2271_v31 = vpop.permute.xlu0 %918 }
 0x127   : > { %853 = vrot.lane.b32.xlu2 %v2182_v19, %s1568_s30 }
 0x12a   : > { %v909_v7 = vpop.permute.xlu1 %908 }
 0x12e   : > { %1106 = vperm.xlu1 %1556, %v1520_v22   ;;  %895 = vrot.lane.b32.xlu0 %v2185_v34, %s1569_s7  ;;  %v2284_v63 = vpop.permute.xlu0 %967 }
 0x12f   : > { %893 = vrot.lane.b32.xlu2 %v2182_v19, %s1569_s7 }
 0x132   : > { %v924_v28 = vpop.permute.xlu1 %923 }
 0x136   : > { %1132 = vrot.lane.b32.xlu1 %v2185_v34, %s1573_s27  ;;  %944 = vrot.lane.b32.xlu0 %v2185_v34, %s1570_s12  ;;  %v2288_v51 = vpop.permute.xlu0 %1016 }
 0x137   : > { %942 = vrot.lane.b32.xlu2 %v2182_v19, %s1570_s12 }
 0x13a   : > { %v958_v23 = vpop.permute.xlu1 %957 }
 0x13e   : > { %1179 = vrot.lane.b32.xlu1 %v2182_v19, %s1574_s13  ;;  %993 = vrot.lane.b32.xlu0 %v2185_v34, %s1571_s23  ;;  %v2292_v2 = vpop.permute.xlu0 %1052 }
 0x13f   : > { %991 = vrot.lane.b32.xlu2 %v2182_v19, %s1571_s23  ;;  %s198_s23 = scalar_lea.vmem %s2531_s4, %s1536_s22 }
 0x142   : > { %v973_v11 = vpop.permute.xlu1 %972 }
 0x146   : > { %1230 = vrot.lane.b32.xlu1 %v2185_v34, %s1575_s26  ;;  %1081 = vrot.lane.b32.xlu0 %v2182_v19, %s1572_s15 }
 0x147   : > { %1111 = vperm.xlu2 %1557, %v1521_v37  }
 0x14a   : > { %v2286_v1 = vpop.permute.xlu1 %1006 }
 0x14e   : > { %1160 = vperm.xlu1 %1556, %v1525_v25   ;;  %1101 = vperm.xlu0 %1558, %v1519_v44  }
 0x14f   : > { %1145 = vperm.xlu2 %1557, %v1522_v58  }
 0x152   : > { %v2290_v20 = vpop.permute.xlu1 %1021 }
 0x156   : > { %1248 = vperm.xlu1 %1556, %v1531_v55   ;;  %1130 = vrot.lane.b32.xlu0 %v2182_v19, %s1573_s27 }
 0x157   : > { %1181 = vrot.lane.b32.xlu2 %v2185_v34, %s1574_s13 }
 0x15a   : > { %v2294_v6 = vpop.permute.xlu1 %1057 }
 0x15e   : > { %1253 = vperm.xlu1 %1556, %v1532_v16   ;;  %1150 = vperm.xlu0 %1558, %v1523_v39  }
 0x15f   : > { %1155 = vperm.xlu2 %1557, %v1524_v52  }
 0x166   : > { %1228 = vrot.lane.b32.xlu0 %v2182_v19, %s1575_s26 }
 0x167   : > { %1194 = vperm.xlu2 %1557, %v1526_v0  }
 0x16e   : > { %1199 = vperm.xlu0 %1558, %v1527_v33  }
 0x16f   : > { %1209 = vperm.xlu2 %1557, %v1529_v43  }
 0x176   : > { %1204 = vperm.xlu0 %1558, %v1528_v47  }
 0x177   : > { %1258 = vperm.xlu2 %1557, %v1533_v26  }
 0x17e   : > { %1243 = vperm.xlu0 %1558, %v1530_v29  }
 0x181   : > { %v854_v40 = vpop.permute.xlu2 %853 }
 0x189   : > { %v894_v53 = vpop.permute.xlu2 %893 }
 0x191   : > { %v943_v5 = vpop.permute.xlu2 %942 }
 0x198   : > { %v856_v41 = vpop.permute.xlu0 %855  ;;  %v2296_v3 = vpop.permute.xlu1 %1083 }
 0x199   : > { %v992_v12 = vpop.permute.xlu2 %991  ;;  %v858_v22 = vsel %vm266_vm6, %v856_v41, %v854_v40  ;;  %v857_v44 = vsel %vm266_vm6, %v854_v40, %v856_v41  ;;  %vm2564_vm6 = vcmp.lt.s32.totalorder %v1751_v56, 111 }
 0x19a   : > { %v2309_v58 = vmul.f32 %v1812_v13, %v858_v22  ;;  %v860_v52 = vmul.f32 %v1815_v14, %v857_v44  ;;  %v1065_v13 = vmul.f32 %v2171_v54, %v2182_v19 }
 0x19c   : > { %v885_v14 = vmul.f32 %v2229_v8, %v2309_v58  ;;  %v890_v41 = vmul.f32 %v2263_v32, %v860_v52 }
 0x1a0   : > { %v896_v62 = vpop.permute.xlu0 %895  ;;  %v2322_v47 = vpop.permute.xlu1 %1106 }
 0x1a1   : > { %v2298_v15 = vpop.permute.xlu2 %1111  ;;  %v897_v37 = vsel %vm312_vm7, %v894_v53, %v896_v62  ;;  %v898_v25 = vsel %vm312_vm7, %v896_v62, %v894_v53  ;;  %2562 = vst [vmem:[#allocation7_spill] sm:$0xff] %v2322_v47  ;;  %v886_v53 = vmul.f32 %v2229_v8, %v860_v52  ;;  %vm2565_vm7 = vmmov %vm2564_vm6 }
 0x1a2   : > { %v2312_v55 = vmul.f32 %v1842_v35, %v898_v25  ;;  %v900_v16 = vmul.f32 %v1847_v36, %v897_v37 }
 0x1a4   : > { %v926_v26 = vmul.f32 %v909_v7, %v2312_v55  ;;  %v927_v29 = vmul.f32 %v909_v7, %v900_v16  ;;  %v929_v40 = vmul.f32 %v2110_v60, %v900_v16  ;;  %v931_v54 = vmul.f32 %v2271_v31, %v900_v16 }
 0x1a5   : > { %v932_v62 = vmul.f32 %v924_v28, %v2312_v55  ;;  %v933_v22 = vmul.f32 %v924_v28, %v900_v16 }
 0x1a6   : > { %v934_v44 = vadd.f32 %v926_v26, %v885_v14  ;;  %v939_v47 = vadd.f32 %v931_v54, %v890_v41 }
 0x1a8   : > { %v945_v39 = vpop.permute.xlu0 %944 }
 0x1a9   : > { %v946_v0 = vsel %vm367_vm12, %v943_v5, %v945_v39  ;;  %v947_v33 = vsel %vm367_vm12, %v945_v39, %v943_v5  ;;  %v2320_v43 = vpop.permute.xlu2 %1145  ;;  %v888_v5 = vmul.f32 %v2053_v21, %v860_v52  ;;  %v935_v39 = vadd.f32 %v927_v29, %v886_v53 }
 0x1aa   : > { %2561 = vst [vmem:[#allocation6_spill] sm:$0xff] %v2320_v43  ;;  %v2327_v35 = vmul.f32 %v1885_v57, %v947_v33  ;;  %v949_v36 = vmul.f32 %v1891_v49, %v946_v0  ;;  %v891_v57 = vmul.f32 %v2240_v30, %v2309_v58  ;;  %v892_v49 = vmul.f32 %v2240_v30, %v860_v52 }
 0x1ab   : > { %v937_v43 = vadd.f32 %v929_v40, %v888_v5  ;;  %v1133_v5 = vpop.permute.xlu1 %1132  ;;  %vm2569_vm12 = vcmask 1043456  }
 0x1ac   : > { %v975_v7 = vmul.f32 %v958_v23, %v2327_v35  ;;  %v976_v37 = vmul.f32 %v958_v23, %v949_v36  ;;  %v978_v25 = vmul.f32 %v2153_v9, %v949_v36  ;;  %v980_v8 = vmul.f32 %v2284_v63, %v949_v36 }
 0x1ad   : > { %v981_v0 = vmul.f32 %v973_v11, %v2327_v35  ;;  %v982_v18 = vmul.f32 %v973_v11, %v949_v36  ;;  %v940_v16 = vadd.f32 %v932_v62, %v891_v57  ;;  %v941_v23 = vadd.f32 %v933_v22, %v892_v49 }
 0x1ae   : > { %v983_v26 = vadd.f32 %v975_v7, %v934_v44  ;;  %v984_v29 = vadd.f32 %v976_v37, %v935_v39  ;;  %v988_v53 = vadd.f32 %v980_v8, %v939_v47  ;;  %v986_v40 = vadd.f32 %v978_v25, %v937_v43 }
 0x1af   : > { %v989_v11 = vadd.f32 %v981_v0, %v940_v16  ;;  %v990_v54 = vadd.f32 %v982_v18, %v941_v23  ;;  %v1070_v43 = vmul.f32 %v2294_v6, %v2185_v34  ;;  %v1068_v22 = vmul.f32 %v2292_v2, %v2185_v34 }
 0x1b0   : > { %v994_v33 = vpop.permute.xlu0 %993  ;;  %v1071_v18 = vmul.f32 %v2187_v10, %v2182_v19  ;;  %v2563_v10 = vld [vmem:[#allocation3_spill] sm:$0xff] }
 0x1b1   : > { %v995_v30 = vsel %vm422_vm13, %v992_v12, %v994_v33  ;;  %v996_v28 = vsel %vm422_vm13, %v994_v33, %v992_v12  ;;  %v1182_v42 = vpop.permute.xlu2 %1181  ;;  %vm2570_vm13 = vmmov %vm2569_vm12 }
 0x1b2   : > { %v2351_v52 = vmul.f32 %v1929_v48, %v996_v28  ;;  %v998_v14 = vmul.f32 %v1934_v50, %v995_v30 }
 0x1b4   : > { %v1024_v36 = vmul.f32 %v2286_v1, %v2351_v52  ;;  %v1025_v41 = vmul.f32 %v2286_v1, %v998_v14  ;;  %v1029_v12 = vmul.f32 %v2288_v51, %v998_v14  ;;  %v1030_v48 = vmul.f32 %v2290_v20, %v2351_v52 }
 0x1b5   : > { %v1031_v50 = vmul.f32 %v2290_v20, %v998_v14  ;;  %v1027_v57 = vmul.f32 %v2161_v4, %v998_v14 }
 0x1b6   : > { %v1037_v47 = vadd.f32 %v1029_v12, %v988_v53  ;;  %v1032_v49 = vadd.f32 %v1024_v36, %v983_v26  ;;  %v1033_v62 = vadd.f32 %v1025_v41, %v984_v29  ;;  %v1038_v7 = vadd.f32 %v1030_v48, %v989_v11 }
 0x1b7   : > { %v1035_v1 = vadd.f32 %v1027_v57, %v986_v40  ;;  %v1039_v37 = vadd.f32 %v1031_v50, %v990_v54  ;;  %v928_v36 = vmul.f32 %v2110_v60, %v2312_v55  ;;  %v887_v12 = vmul.f32 %v2053_v21, %v2309_v58 }
 0x1b8   : > { %v1082_v25 = vpop.permute.xlu0 %1081  ;;  %v2368_v8 = vadd.f32 %v1070_v43, %v1037_v47  ;;  %v1073_v20 = vadd.f32 %v1065_v13, %v1032_v49  ;;  %v1074_v44 = vadd.f32 %v2191_v17, %v1033_v62  ;;  %v1079_v28 = vadd.f32 %v1071_v18, %v1038_v7 }
 0x1b9   : > { %v1085_v39 = vsel %vm541_vm14, %v1082_v25, %v2296_v3  ;;  %v1086_v34 = vsel %vm541_vm14, %v2296_v3, %v1082_v25  ;;  %v2377_v0 = vadd.f32 %v1068_v22, %v1035_v1  ;;  %v1080_v13 = vadd.f32 %v2195_v61, %v1039_v37  ;;  %v2386_v17 = vpop.permute.xlu2 %1155  ;;  %v1180_v3 = vpop.permute.xlu1 %1179  ;;  %vm2572_vm14 = vmmov %vm2569_vm12 }
 0x1ba   : > { %v2380_v33 = vmul.f32 %v2029_v24, %v1085_v39  ;;  %v2383_v30 = vmul.f32 %v2563_v10, %v1086_v34  ;;  %v977_v48 = vmul.f32 %v2153_v9, %v2327_v35  ;;  %v936_v43 = vadd.f32 %v928_v36, %v887_v12 }
 0x1bb   : > { %v1184_v21 = vsel %vm651_vm3, %v1182_v42, %v1180_v3  ;;  %v1026_v9 = vmul.f32 %v2161_v4, %v2351_v52  ;;  %v1028_v4 = vmul.f32 %v2288_v51, %v2351_v52 }
 0x1bc   : > { %v1114_v16 = vmul.f32 %v2279_v38, %v2380_v33  ;;  %v1115_v23 = vmul.f32 %v2279_v38, %v2383_v30  ;;  %v1120_v50 = vmul.f32 %v2298_v15, %v2380_v33 }
 0x1be   : > { %v2392_v14 = vadd.f32 %v1114_v16, %v1073_v20  ;;  %v2394_v26 = vadd.f32 %v1115_v23, %v1074_v44  ;;  %v1128_v22 = vadd.f32 %v1120_v50, %v1079_v28  ;;  %v2566_v44 = vld [vmem:[#allocation4_spill] sm:$0xff] }
 0x1c0   : > { %v1102_v24 = vpop.permute.xlu0 %1101 }
 0x1c1   : > { %v2396_v29 = vpop.permute.xlu2 %1194  ;;  %v1231_v53 = vpop.permute.xlu1 %1230  ;;  %v1116_v51 = vmul.f32 %v1102_v24, %v2380_v33  ;;  %v1117_v52 = vmul.f32 %v1102_v24, %v2383_v30  ;;  %v1069_v24 = vmul.f32 %v2294_v6, %v2182_v19 }
 0x1c3   : > { %v1125_v12 = vadd.f32 %v1117_v52, %v2377_v0 }
 0x1c8   : > { %v1131_v40 = vpop.permute.xlu0 %1130 }
 0x1c9   : > { %v1134_v61 = vsel %vm596_vm5, %v1131_v40, %v1133_v5  ;;  %v1135_v11 = vsel %vm596_vm5, %v1133_v5, %v1131_v40  ;;  %v1121_v5 = vmul.f32 %v2298_v15, %v2383_v30  ;;  %v1210_v60 = vpop.permute.xlu2 %1209  ;;  %v1161_v57 = vpop.permute.xlu1 %1160  ;;  %v889_v15 = vmul.f32 %v2263_v32, %v2309_v58  ;;  %vm2573_vm5 = vmmov %vm2569_vm12 }
 0x1ca   : > { %v2405_v38 = vmul.f32 %v2066_v59, %v1134_v61  ;;  %v2408_v41 = vmul.f32 %v2069_v27, %v1135_v11  ;;  %v930_v59 = vmul.f32 %v2271_v31, %v2312_v55  ;;  %v1183_v27 = vsel %vm651_vm3, %v1180_v3, %v1182_v42  ;;  %v2568_v61 = vld [vmem:[#allocation7_spill] sm:$0xff]  ;;  %vm2574_vm3 = vmmov %vm2573_vm5 }
 0x1cb   : > { %v979_v31 = vmul.f32 %v2284_v63, %v2327_v35  ;;  %v985_v55 = vadd.f32 %v977_v48, %v936_v43  ;;  %v1129_v62 = vadd.f32 %v1121_v5, %v1080_v13  ;;  %v2433_v7 = vmul.f32 %v2081_v45, %v1183_v27  ;;  %vm2575_vm11 = vmmov %vm2574_vm3 }
 0x1cc   : > { %v1169_v47 = vmul.f32 %v1161_v57, %v2405_v38  ;;  %v1170_v49 = vmul.f32 %v1161_v57, %v2408_v41  ;;  %v938_v1 = vadd.f32 %v930_v59, %v889_v15  ;;  %v2436_v42 = vmul.f32 %v2087_v46, %v1184_v21  ;;  %vm2576_vm2 = vmmov %vm2574_vm3 }
 0x1cd   : > { %v1034_v37 = vadd.f32 %v1026_v9, %v985_v55  ;;  %v1067_v32 = vmul.f32 %v2292_v2, %v2182_v19  ;;  %v1218_v35 = vmul.f32 %v1210_v60, %v2433_v7  ;;  %v2567_v2 = vld [vmem:[#allocation5_spill] sm:$0xff]  ;;  %v1118_v11 = vmul.f32 %v2568_v61, %v2380_v33  ;;  %v2475_v55 = vld.sshfl [vmem:[#allocation1] sm:$0xff pattern:$0x75316420]  ;;  %vm2577_vm0 = vmmov %vm2576_vm2 }
 0x1ce   : > { %v1178_v18 = vadd.f32 %v1170_v49, %v1129_v62  ;;  %v1177_v25 = vadd.f32 %v1169_v47, %v1128_v22  ;;  %v987_v63 = vadd.f32 %v979_v31, %v938_v1  ;;  %v1219_v20 = vmul.f32 %v1210_v60, %v2436_v42  ;;  %v2477_v62 = vld.sshfl [vmem:[#allocation1 + $0x8] sm:$0xff pattern:$0x75316420]  ;;  %vm2578_vm4 = vmmov %vm2577_vm0 }
 0x1cf   : > { %v1075_v10 = vadd.f32 %v1067_v32, %v1034_v37  ;;  %v1119_v60 = vmul.f32 %v2568_v61, %v2383_v30  ;;  %v1167_v30 = vmul.f32 %v2386_v17, %v2405_v38  ;;  %vm2579_vm10 = vmmov %vm2577_vm0 }
 0x1d0   : > { %v1151_v54 = vpop.permute.xlu0 %1150  ;;  %v1226_v13 = vadd.f32 %v1218_v35, %v1177_v25  ;;  %v1227_v28 = vadd.f32 %v1219_v20, %v1178_v18  ;;  %v1036_v23 = vadd.f32 %v1028_v4, %v987_v63  ;;  %v1212_v4 = vmul.f32 %v2396_v29, %v2433_v7  ;;  %v2571_v25 = vld [vmem:[#allocation6_spill] sm:$0xff]  ;;  %vm2580_vm9 = vmmov %vm2577_vm0 }
 0x1d1   : > { %v1259_v16 = vpop.permute.xlu2 %1258  ;;  %v1165_v3 = vmul.f32 %v1151_v54, %v2405_v38  ;;  %v1166_v56 = vmul.f32 %v1151_v54, %v2408_v41  ;;  %v1124_v36 = vadd.f32 %v1116_v51, %v1075_v10  ;;  %v1249_v5 = vpop.permute.xlu1 %1248  ;;  %v1127_v37 = vadd.f32 %v1119_v60, %v2368_v8 }
 0x1d2   : > { %v1077_v54 = vadd.f32 %v1069_v24, %v1036_v23  ;;  %v1168_v18 = vmul.f32 %v2386_v17, %v2408_v41  ;;  %v1163_v32 = vmul.f32 %v2571_v25, %v2405_v38  ;;  %v1164_v52 = vmul.f32 %v2571_v25, %v2408_v41 }
 0x1d3   : > { %v1173_v59 = vadd.f32 %v1165_v3, %v1124_v36  ;;  %v1174_v27 = vadd.f32 %v1166_v56, %v1125_v12 }
 0x1d4   : > { %v1126_v49 = vadd.f32 %v1118_v11, %v1077_v54 }
 0x1d6   : > { %v1175_v51 = vadd.f32 %v1167_v30, %v1126_v49 }
 0x1d8   : > { %v1229_v58 = vpop.permute.xlu0 %1228 }
 0x1d9   : > { %v1232_v45 = vsel %vm2564_vm6, %v1229_v58, %v1231_v53  ;;  %v1233_v46 = vsel %vm2565_vm7, %v1231_v53, %v1229_v58  ;;  %v1254_v23 = vpop.permute.xlu1 %1253  ;;  %vm1378_vm6 = vcmask 1045509   ;;  %vm2581_vm7 = vmmov %vm2577_vm0 }
 0x1da   : > { %v2451_v39 = vmul.f32 %v2566_v44, %v1232_v45  ;;  %v2454_v34 = vmul.f32 %v2567_v2, %v1233_v46  ;;  %v1342_v45 = vrot.slane %v2475_v55, 3  ;;  %v1343_v46 = vrot.slane %v2477_v62, 3 }
 0x1dc   : > { %v1267_v53 = vmul.f32 %v1259_v16, %v2451_v39  ;;  %v1268_v40 = vmul.f32 %v1259_v16, %v2454_v34  ;;  %v1263_v9 = vmul.f32 %v1249_v5, %v2451_v39  ;;  %v1264_v47 = vmul.f32 %v1249_v5, %v2454_v34 }
 0x1dd   : > { %v1171_v16 = vadd.f32 %v1163_v32, %v2392_v14  ;;  %v1265_v61 = vmul.f32 %v1254_v23, %v2451_v39  ;;  %v1266_v11 = vmul.f32 %v1254_v23, %v2454_v34  ;;  %v1213_v14 = vmul.f32 %v2396_v29, %v2436_v42 }
 0x1de   : > { %v1275_v48 = vadd.f32 %v1267_v53, %v1226_v13  ;;  %v1276_v50 = vadd.f32 %v1268_v40, %v1227_v28  ;;  %v1176_v28 = vadd.f32 %v1168_v18, %v1127_v37  ;;  %v1338_v5 = vrot.slane %v2475_v55, 1 }
 0x1e0   : > { %v1319_v57 = vsel %vm2569_vm12, %v1275_v48, 0.0  ;;  %v1326_v43 = vsel %vm2570_vm13, %v1276_v50, 0.0  ;;  %v1200_v19 = vpop.permute.xlu0 %1199  ;;  %vm1382_vm12 = vcmask 1046534   ;;  %vm1386_vm13 = vcmask 1047559  }
 0x1e1   : > { %v1320_v6 = vrot.slane %v1319_v57, 4  ;;  %v1327_v21 = vrot.slane %v1326_v43, 4  ;;  %v1214_v33 = vmul.f32 %v1200_v19, %v2433_v7  ;;  %v1215_v0 = vmul.f32 %v1200_v19, %v2436_v42 }
 0x1e3   : > { %v1321_v15 = vadd.f32 %v1320_v6, %v1319_v57  ;;  %v1328_v31 = vadd.f32 %v1327_v21, %v1326_v43  ;;  %v1222_v22 = vadd.f32 %v1214_v33, %v1173_v59  ;;  %v1223_v1 = vadd.f32 %v1215_v0, %v1174_v27 }
 0x1e4   : > { %v1172_v57 = vadd.f32 %v1164_v52, %v2394_v26  ;;  %v1339_v43 = vrot.slane %v2477_v62, 1  ;;  %v1220_v21 = vadd.f32 %v1212_v4, %v1171_v16 }
 0x1e5   : > { %v1322_v63 = vrot.slane %v1321_v15, 2  ;;  %v1329_v58 = vrot.slane %v1328_v31, 2  ;;  %v1271_v35 = vadd.f32 %v1263_v9, %v1222_v22  ;;  %v1272_v20 = vadd.f32 %v1264_v47, %v1223_v1 }
 0x1e6   : > { %v1221_v22 = vadd.f32 %v1213_v14, %v1172_v57 }
 0x1e7   : > { %v1323_v44 = vadd.f32 %v1322_v63, %v1321_v15  ;;  %v1330_v8 = vadd.f32 %v1329_v58, %v1328_v31  ;;  %v1291_v2 = vsel %vm2572_vm14, %v1271_v35, 0.0  ;;  %v1298_v17 = vsel %vm2573_vm5, %v1272_v20, 0.0 }
 0x1e8   : > { %v1292_v10 = vrot.slane %v1291_v2, 4  ;;  %v1299_v38 = vrot.slane %v1298_v17, 4  ;;  %v1205_v13 = vpop.permute.xlu0 %1204 }
 0x1e9   : > { %v1324_v3 = vrot.slane %v1323_v44, 1  ;;  %v1331_v56 = vrot.slane %v1330_v8, 1  ;;  %v1216_v53 = vmul.f32 %v1205_v13, %v2433_v7  ;;  %v1217_v40 = vmul.f32 %v1205_v13, %v2436_v42 }
 0x1ea   : > { %v1293_v41 = vadd.f32 %v1292_v10, %v1291_v2  ;;  %v1300_v24 = vadd.f32 %v1299_v38, %v1298_v17  ;;  %v1341_v13 = vrot.slane %v2477_v62, 2 }
 0x1eb   : > { %v1325_v36 = vadd.f32 %v1324_v3, %v1323_v44  ;;  %v1332_v12 = vadd.f32 %v1331_v56, %v1330_v8  ;;  %v1224_v48 = vadd.f32 %v1216_v53, %v1175_v51  ;;  %v1225_v50 = vadd.f32 %v1217_v40, %v1176_v28 }
 0x1ec   : > { %v1294_v60 = vrot.slane %v1293_v41, 2  ;;  %v1301_v54 = vrot.slane %v1300_v24, 2  ;;  %v1340_v3 = vrot.slane %v2475_v55, 2 }
 0x1ed   : > { %v1359_v7 = vadd.f32 %v1343_v46, %v1332_v12  ;;  %v1273_v59 = vadd.f32 %v1265_v61, %v1224_v48  ;;  %v1274_v27 = vadd.f32 %v1266_v11, %v1225_v50  ;;  %v1358_v33 = vadd.f32 %v1342_v45, %v1325_v36 }
 0x1ee   : > { %v1295_v19 = vadd.f32 %v1294_v60, %v1293_v41  ;;  %v1302_v6 = vadd.f32 %v1301_v54, %v1300_v24 }
 0x1ef   : > { %v1371_v0 = vrot.slane %v1359_v7, 4  ;;  %v1305_v9 = vsel %vm2574_vm3, %v1273_v59, 0.0  ;;  %v1312_v29 = vsel %vm2575_vm11, %v1274_v27, 0.0 }
 0x1f0   : > { %v1296_v42 = vrot.slane %v1295_v19, 1  ;;  %v1303_v47 = vrot.slane %v1302_v6, 1  ;;  %v1306_v49 = vrot.slane %v1305_v9, 4  ;;  %v1313_v30 = vrot.slane %v1312_v29, 4  ;;  %v1244_v15 = vpop.permute.xlu0 %1243 }
 0x1f1   : > { %v1375_v31 = vsel %vm2576_vm2, %v1358_v33, %v1371_v0  ;;  %v1261_v26 = vmul.f32 %v1244_v15, %v2451_v39  ;;  %v1262_v1 = vmul.f32 %v1244_v15, %v2454_v34 }
 0x1f2   : > { %v1297_v37 = vadd.f32 %v1296_v42, %v1295_v19  ;;  %v1304_v4 = vadd.f32 %v1303_v47, %v1302_v6  ;;  %v1307_v18 = vadd.f32 %v1306_v49, %v1305_v9  ;;  %v1314_v25 = vadd.f32 %v1313_v30, %v1312_v29 }
 0x1f3   : > { %v1269_v32 = vadd.f32 %v1261_v26, %v1220_v21  ;;  %v1270_v63 = vadd.f32 %v1262_v1, %v1221_v22  ;;  %v1384_v19 = vrot.slane %v1375_v31, 5 }
 0x1f4   : > { %v1355_v58 = vadd.f32 %v1339_v43, %v1304_v4  ;;  %v1308_v35 = vrot.slane %v1307_v18, 2  ;;  %v1354_v20 = vadd.f32 %v1338_v5, %v1297_v37  ;;  %v1315_v45 = vrot.slane %v1314_v25, 2 }
 0x1f5   : > { %v1277_v46 = vsel %vm2577_vm0, %v1269_v32, 0.0  ;;  %v1284_v51 = vsel %vm2578_vm4, %v1270_v63, 0.0 }
 0x1f6   : > { %v1369_v52 = vrot.slane %v1355_v58, 4  ;;  %v1309_v44 = vadd.f32 %v1308_v35, %v1307_v18  ;;  %v1278_v8 = vrot.slane %v1277_v46, 4  ;;  %v1285_v39 = vrot.slane %v1284_v51, 4 }
 0x1f7   : > { %v1316_v2 = vadd.f32 %v1315_v45, %v1314_v25 }
 0x1f8   : > { %v1373_v34 = vsel %vm2579_vm10, %v1354_v20, %v1369_v52  ;;  %v1310_v17 = vrot.slane %v1309_v44, 1  ;;  %v1279_v10 = vadd.f32 %v1278_v8, %v1277_v46  ;;  %v1286_v38 = vadd.f32 %v1285_v39, %v1284_v51 }
 0x1f9   : > { %v1317_v28 = vrot.slane %v1316_v2, 1  ;;  %v1376_v7 = vrot.slane %v1373_v34, 7 }
 0x1fa   : > { %v1280_v16 = vrot.slane %v1279_v10, 2  ;;  %v1287_v23 = vrot.slane %v1286_v38, 2  ;;  %v1311_v56 = vadd.f32 %v1310_v17, %v1309_v44 }
 0x1fb   : > { %v1318_v53 = vadd.f32 %v1317_v28, %v1316_v2 }
 0x1fc   : > { %v1281_v40 = vadd.f32 %v1280_v16, %v1279_v10  ;;  %v1288_v41 = vadd.f32 %v1287_v23, %v1286_v38  ;;  %v1356_v36 = vadd.f32 %v1340_v3, %v1311_v56 }
 0x1fd   : > { %v1357_v24 = vadd.f32 %v1341_v13, %v1318_v53 }
 0x1fe   : > { %v1282_v61 = vrot.slane %v1281_v40, 1  ;;  %v1289_v11 = vrot.slane %v1288_v41, 1 }
 0x1ff   : > { %v1370_v12 = vrot.slane %v1357_v24, 4 }
 0x200   : > { %v1283_v48 = vadd.f32 %v1282_v61, %v1281_v40  ;;  %v1290_v50 = vadd.f32 %v1289_v11, %v1288_v41 }
 0x201   : > { %v1374_v14 = vsel %vm2580_vm9, %v1356_v36, %v1370_v12 }
 0x202   : > { %v1353_v5 = vadd.f32 %v2477_v62, %v1290_v50  ;;  %v1352_v60 = vadd.f32 %v2475_v55, %v1283_v48  ;;  %v1380_v27 = vrot.slane %v1374_v14, 6 }
 0x204   : > { %v1368_v54 = vrot.slane %v1353_v5, 4 }
 0x206   : > { %v1372_v59 = vsel %vm2581_vm7, %v1352_v60, %v1368_v54 }
 0x207   : > { %v1377_v57 = vsel %vm842_vm8, %v1376_v7, %v1372_v59 }
 0x208   : > { %v1379_v43 = vsel %vm1378_vm6, %v1376_v7, %v1377_v57 }
 0x209   : > { %v1381_v6 = vsel %vm844_vm1, %v1380_v27, %v1379_v43 }
 0x20a   : > { %v1383_v55 = vsel %vm1382_vm12, %v1380_v27, %v1381_v6 }
 0x20b   : > { %v1385_v62 = vsel %vm846_vm15, %v1384_v19, %v1383_v55 }
 0x20c   : > { %v1387_v21 = vsel %vm1386_vm13, %v1384_v19, %v1385_v62 }
 0x20d   : > { %1389 = vst [vmem:[%s198_s23] sm:$0xff] %v1387_v21 }
 0x20e PF: > { %s15_s17 = sadd.s32 1, %s1565_s17  }
 0x20f   : > { %p12_p4 = scmp.ge.s32.totalorder %s15_s17, 4  }
 0x211   :  { %14 = sbr.rel (!%p12_p4) target bundleno = 2 (0x2), region = 85 }

</bundles_post_ra>
